<compile_context>
chip_gen: v5e
topology: v5e:2x2
jax: 0.10.0
libtpu: 0.0.40
codegen_flags: <defaults>
</compile_context>

<pallas_src>
import jax
import jax.numpy as jnp
import numpy as np
from jax import lax
from jax.experimental import pallas as pl
from jax.experimental.pallas import tpu as pltpu


# --------------------------- fused Pallas kernel -----------------------------

def _soundcnn_kernel(x_ref,
                     t1_ref, b1_ref, pe1_ref, po1_ref, se1_ref, so1_ref,
                     t2_ref, b2_ref, pe2_ref, po2_ref, se2_ref, so2_ref,
                     t3_ref, b3_ref, g_ref, fw1_ref, fb1_ref, fw2_ref, fb2_ref,
                     o_ref):
    f32 = jnp.float32

    def conv_relu(a, t_ref, b_ref):
        # a: (Hin, Win*Cin); t_ref: (3, Win*Cin, Wout*Cout); b_ref: (1, Wout*Cout)
        ho = a.shape[0] - 2
        acc = jnp.dot(a[0:ho, :], t_ref[0], preferred_element_type=f32)
        acc = acc + jnp.dot(a[1:ho + 1, :], t_ref[1], preferred_element_type=f32)
        acc = acc + jnp.dot(a[2:ho + 2, :], t_ref[2], preferred_element_type=f32)
        return jnp.maximum(acc + b_ref[...], 0.0)

    def maxpool2x2(a, pe_ref, po_ref, se_ref, so_ref):
        # row pairs via 0/1 selection matmuls, then column (W*C) pairs likewise
        rmax = jnp.maximum(
            jnp.dot(pe_ref[...], a, preferred_element_type=f32),
            jnp.dot(po_ref[...], a, preferred_element_type=f32))
        return jnp.maximum(
            jnp.dot(rmax, se_ref[...], preferred_element_type=f32),
            jnp.dot(rmax, so_ref[...], preferred_element_type=f32))

    a = x_ref[0]                                             # (H0, W0*Cin)
    a = conv_relu(a, t1_ref, b1_ref)                         # (20, 20*16)
    a = maxpool2x2(a, pe1_ref, po1_ref, se1_ref, so1_ref)    # (10, 10*16)
    a = conv_relu(a, t2_ref, b2_ref)                         # (8,  8*32)
    a = maxpool2x2(a, pe2_ref, po2_ref, se2_ref, so2_ref)    # (4,  4*32)
    a = conv_relu(a, t3_ref, b3_ref)                         # (2,  2*64)

    # global average pool: sum over rows, then (W*C,C) summation matrix that
    # already carries the 1/(H*W) factor.
    rsum = jnp.sum(a, axis=0, keepdims=True)                 # (1, W3*64)
    pooled = jnp.dot(rsum, g_ref[...], preferred_element_type=f32)   # (1, 64)

    # TODO(synk): Dropout(0.3) -> identity (eval mode).
    h = jnp.maximum(
        jnp.dot(pooled, fw1_ref[...], preferred_element_type=f32) + fb1_ref[...],
        0.0)                                                 # (1, 128)
    logits = jnp.dot(h, fw2_ref[...], preferred_element_type=f32) + fb2_ref[...]
    o_ref[0] = logits                                        # (1, n_classes)


# --------------------------- wrapper-side weight prep -------------------------

def _toeplitz(w, win):
    """w: (3,3,Cin,Cout) HWIO conv weight -> (3, win*Cin, wout*Cout) so that
    conv(x)[oh, ow*Cout+co] = sum_kh x2d[oh+kh, :] @ T[kh], with x2d = (H, W*Cin)."""
    kh, kw, cin, cout = w.shape
    wout = win - (kw - 1)
    d = np.arange(win)[:, None] - np.arange(wout)[None, :]   # w_pos - ow
    mask = ((d >= 0) & (d < kw)).astype(np.float32)          # valid taps
    kw_idx = np.clip(d, 0, kw - 1)                           # (win, wout)
    t = w[:, kw_idx, :, :]                                   # (3, win, wout, cin, cout)
    t = t * mask[None, :, :, None, None]
    t = jnp.transpose(t, (0, 1, 3, 2, 4))                    # (3, win, cin, wout, cout)
    return t.reshape(kh, win * cin, wout * cout)


def _pool_mats(h, w, c):
    """0/1 selection matrices implementing F.max_pool2d(x,(2,2)) (floor) in the
    (H, W*C) layout: rows via (h//2,h) selectors, columns via (w*c,(w//2)*c)."""
    ho, wo = h // 2, w // 2
    pe = np.zeros((ho, h), np.float32)
    po = np.zeros((ho, h), np.float32)
    pe[np.arange(ho), 2 * np.arange(ho)] = 1.0
    po[np.arange(ho), 2 * np.arange(ho) + 1] = 1.0
    k = np.arange(wo * c)
    blk, cc = k // c, k % c
    se = np.zeros((w * c, wo * c), np.float32)
    so = np.zeros((w * c, wo * c), np.float32)
    se[(2 * blk) * c + cc, k] = 1.0
    so[(2 * blk + 1) * c + cc, k] = 1.0
    return pe, po, se, so


def _gap_mat(h, w, c):
    """(w*c, c) summation matrix with the 1/(h*w) average folded in."""
    j = np.arange(w * c)
    return ((j[:, None] % c) == np.arange(c)[None, :]).astype(np.float32) / float(h * w)


def _full_spec(arr):
    ndim = arr.ndim

    def idx(i):
        return (0,) * ndim

    return pl.BlockSpec(tuple(arr.shape), idx)


# --------------------------- model ---------------------------------------------

def init_params(key):
    ks = jax.random.split(key, 10)

    def conv_w(k, cin, cout):
        fan_in = 3 * 3 * cin
        return jax.random.normal(k, (3, 3, cin, cout), jnp.float32) / np.sqrt(fan_in)

    def lin_w(k, cin, cout):
        return jax.random.normal(k, (cin, cout), jnp.float32) / np.sqrt(cin)

    return {
        "w1": conv_w(ks[0], 1, 16),   "b1": 0.01 * jax.random.normal(ks[1], (16,), jnp.float32),
        "w2": conv_w(ks[2], 16, 32),  "b2": 0.01 * jax.random.normal(ks[3], (32,), jnp.float32),
        "w3": conv_w(ks[4], 32, 64),  "b3": 0.01 * jax.random.normal(ks[5], (64,), jnp.float32),
        "fw1": lin_w(ks[6], 64, 128), "fb1": 0.01 * jax.random.normal(ks[7], (128,), jnp.float32),
        "fw2": lin_w(ks[8], 128, 50), "fb2": 0.01 * jax.random.normal(ks[9], (50,), jnp.float32),
    }


def sound_cnn_forward(params, x_nchw):
    x = jnp.transpose(x_nchw, (0, 2, 3, 1)).astype(jnp.float32)   # NHWC
    n, h0, w0, c0 = x.shape
    x2d = x.reshape(n, h0, w0 * c0)                               # (N, H, W*Cin)

    c1 = params["w1"].shape[-1]
    c2 = params["w2"].shape[-1]
    c3 = params["w3"].shape[-1]

    h1, w1 = h0 - 2, w0 - 2
    hp1, wp1 = h1 // 2, w1 // 2
    h2, w2 = hp1 - 2, wp1 - 2
    hp2, wp2 = h2 // 2, w2 // 2
    h3, w3 = hp2 - 2, wp2 - 2

    # block-Toeplitz conv weights + bias rows (wrapper-side, tiny)
    t1 = _toeplitz(params["w1"], w0)
    t2 = _toeplitz(params["w2"], wp1)
    t3 = _toeplitz(params["w3"], wp2)
    b1r = jnp.tile(params["b1"], (w1,)).reshape(1, w1 * c1)
    b2r = jnp.tile(params["b2"], (w2,)).reshape(1, w2 * c2)
    b3r = jnp.tile(params["b3"], (w3,)).reshape(1, w3 * c3)

    pe1, po1, se1, so1 = _pool_mats(h1, w1, c1)
    pe2, po2, se2, so2 = _pool_mats(h2, w2, c2)
    g = _gap_mat(h3, w3, c3)

    fw1, fw2 = params["fw1"], params["fw2"]
    fb1r = params["fb1"].reshape(1, -1)
    fb2r = params["fb2"].reshape(1, -1)
    ncls = fw2.shape[-1]

    weights = [t1, b1r, pe1, po1, se1, so1,
               t2, b2r, pe2, po2, se2, so2,
               t3, b3r, g, fw1, fb1r, fw2, fb2r]

    x_spec = pl.BlockSpec((1, h0, w0 * c0), lambda i: (i, 0, 0))
    out_spec = pl.BlockSpec((1, 1, ncls), lambda i: (i, 0, 0))

    out = pl.pallas_call(
        _soundcnn_kernel,
        out_shape=jax.ShapeDtypeStruct((n, 1, ncls), jnp.float32),
        grid=(n,),
        in_specs=[x_spec] + [_full_spec(w) for w in weights],
        out_specs=out_spec,
        compiler_params=pltpu.CompilerParams(
            dimension_semantics=("parallel",)),
    )(x2d, *weights)
    return out.reshape(n, ncls)


# --------------------------- pure-JAX reference -------------------------------

def reference_forward(params, x_nchw):
    x = jnp.transpose(x_nchw, (0, 2, 3, 1)).astype(jnp.float32)

    def conv(x, w, b):
        y = lax.conv_general_dilated(x, w, (1, 1), "VALID",
                                     dimension_numbers=("NHWC", "HWIO", "NHWC"))
        return jax.nn.relu(y + b)

    def pool(x):
        return lax.reduce_window(x, -jnp.inf, lax.max,
                                 (1, 2, 2, 1), (1, 2, 2, 1), "VALID")

    x = conv(x, params["w1"], params["b1"]); x = pool(x)
    x = conv(x, params["w2"], params["b2"]); x = pool(x)
    x = conv(x, params["w3"], params["b3"])
    p = jnp.mean(x, axis=(1, 2))
    h = jax.nn.relu(p @ params["fw1"] + params["fb1"])
    return h @ params["fw2"] + params["fb2"]


# --------------------------- main ----------------------------------------------

if __name__ == "__main__":
    key = jax.random.PRNGKey(0)
    pkey, xkey = jax.random.split(key)
    params = init_params(pkey)

    # batch=2, channels=1 (mono spectrogram), spatial 22x22:
    # 22 -conv-> 20 -pool-> 10 -conv-> 8 -pool-> 4 -conv-> 2 -globalpool-> 1
    x = jax.random.normal(xkey, (2, 1, 22, 22), jnp.float32)

    out = jax.jit(sound_cnn_forward)(params, x)
    out = jax.block_until_ready(out)

    ref = jax.block_until_ready(reference_forward(params, x))

    assert out.shape == (2, 50), f"bad output shape {out.shape}"
    err = float(jnp.max(jnp.abs(out - ref)))
    scale = float(jnp.max(jnp.abs(ref))) + 1e-6
    # note: default TPU MXU precision (bf16 passes) in both paths keeps this from 1e-5
    assert err / scale < 2e-2, f"mismatch vs reference: abs err {err}, scale {scale}"

    print("KERNEL_OK")
</pallas_src>

<mosaic_0001>
module attributes {stable_mosaic.version = 11 : i64} {
  func.func @_soundcnn_kernel(%arg0: i32, %arg1: memref<1x22x22xf32, #tpu.memory_space<vmem>>, %arg2: memref<3x22x320xf32, #tpu.memory_space<vmem>>, %arg3: memref<1x320xf32, #tpu.memory_space<vmem>>, %arg4: memref<10x20xf32, #tpu.memory_space<vmem>>, %arg5: memref<10x20xf32, #tpu.memory_space<vmem>>, %arg6: memref<320x160xf32, #tpu.memory_space<vmem>>, %arg7: memref<320x160xf32, #tpu.memory_space<vmem>>, %arg8: memref<3x160x256xf32, #tpu.memory_space<vmem>>, %arg9: memref<1x256xf32, #tpu.memory_space<vmem>>, %arg10: memref<4x8xf32, #tpu.memory_space<vmem>>, %arg11: memref<4x8xf32, #tpu.memory_space<vmem>>, %arg12: memref<256x128xf32, #tpu.memory_space<vmem>>, %arg13: memref<256x128xf32, #tpu.memory_space<vmem>>, %arg14: memref<3x128x128xf32, #tpu.memory_space<vmem>>, %arg15: memref<1x128xf32, #tpu.memory_space<vmem>>, %arg16: memref<128x64xf32, #tpu.memory_space<vmem>>, %arg17: memref<64x128xf32, #tpu.memory_space<vmem>>, %arg18: memref<1x128xf32, #tpu.memory_space<vmem>>, %arg19: memref<128x50xf32, #tpu.memory_space<vmem>>, %arg20: memref<1x50xf32, #tpu.memory_space<vmem>>, %arg21: memref<1x1x50xf32, #tpu.memory_space<vmem>>) attributes {dimension_semantics = [#tpu.dimension_semantics<parallel>], iteration_bounds = array<i64: 2>, scalar_prefetch = 0 : i64, scratch_operands = 0 : i64, tpu.core_type = #tpu.core_type<tc>, window_params = [{transform_indices = @transform_0, window_bounds = array<i64: 1, 22, 22>}, {pipeline_mode = #tpu.pipeline_mode<synchronous>, transform_indices = @transform_1, window_bounds = array<i64: 3, 22, 320>}, {pipeline_mode = #tpu.pipeline_mode<synchronous>, transform_indices = @transform_2, window_bounds = array<i64: 1, 320>}, {pipeline_mode = #tpu.pipeline_mode<synchronous>, transform_indices = @transform_3, window_bounds = array<i64: 10, 20>}, {pipeline_mode = #tpu.pipeline_mode<synchronous>, transform_indices = @transform_4, window_bounds = array<i64: 10, 20>}, {pipeline_mode = #tpu.pipeline_mode<synchronous>, transform_indices = @transform_5, window_bounds = array<i64: 320, 160>}, {pipeline_mode = #tpu.pipeline_mode<synchronous>, transform_indices = @transform_6, window_bounds = array<i64: 320, 160>}, {pipeline_mode = #tpu.pipeline_mode<synchronous>, transform_indices = @transform_7, window_bounds = array<i64: 3, 160, 256>}, {pipeline_mode = #tpu.pipeline_mode<synchronous>, transform_indices = @transform_8, window_bounds = array<i64: 1, 256>}, {pipeline_mode = #tpu.pipeline_mode<synchronous>, transform_indices = @transform_9, window_bounds = array<i64: 4, 8>}, {pipeline_mode = #tpu.pipeline_mode<synchronous>, transform_indices = @transform_10, window_bounds = array<i64: 4, 8>}, {pipeline_mode = #tpu.pipeline_mode<synchronous>, transform_indices = @transform_11, window_bounds = array<i64: 256, 128>}, {pipeline_mode = #tpu.pipeline_mode<synchronous>, transform_indices = @transform_12, window_bounds = array<i64: 256, 128>}, {pipeline_mode = #tpu.pipeline_mode<synchronous>, transform_indices = @transform_13, window_bounds = array<i64: 3, 128, 128>}, {pipeline_mode = #tpu.pipeline_mode<synchronous>, transform_indices = @transform_14, window_bounds = array<i64: 1, 128>}, {pipeline_mode = #tpu.pipeline_mode<synchronous>, transform_indices = @transform_15, window_bounds = array<i64: 128, 64>}, {pipeline_mode = #tpu.pipeline_mode<synchronous>, transform_indices = @transform_16, window_bounds = array<i64: 64, 128>}, {pipeline_mode = #tpu.pipeline_mode<synchronous>, transform_indices = @transform_17, window_bounds = array<i64: 1, 128>}, {pipeline_mode = #tpu.pipeline_mode<synchronous>, transform_indices = @transform_18, window_bounds = array<i64: 128, 50>}, {pipeline_mode = #tpu.pipeline_mode<synchronous>, transform_indices = @transform_19, window_bounds = array<i64: 1, 50>}, {transform_indices = @transform_20, window_bounds = array<i64: 1, 1, 50>}]} {
    %c0 = arith.constant 0 : index
    %c0_0 = arith.constant 0 : index
    %c0_1 = arith.constant 0 : index
    %0 = vector.load %arg1[%c0, %c0_0, %c0_1] : memref<1x22x22xf32, #tpu.memory_space<vmem>>, vector<1x22x22xf32>
    %1 = vector.shape_cast %0 : vector<1x22x22xf32> to vector<22x22xf32>
    %2 = vector.extract_strided_slice %1 {offsets = [0, 0], sizes = [20, 22], strides = [1, 1]} : vector<22x22xf32> to vector<20x22xf32>
    %c0_2 = arith.constant 0 : index
    %c0_3 = arith.constant 0 : index
    %c0_4 = arith.constant 0 : index
    %3 = vector.load %arg2[%c0_2, %c0_3, %c0_4] : memref<3x22x320xf32, #tpu.memory_space<vmem>>, vector<1x22x320xf32>
    %4 = vector.shape_cast %3 : vector<1x22x320xf32> to vector<22x320xf32>
    %cst = arith.constant dense<0.000000e+00> : vector<20x320xf32>
    %5 = tpu.matmul %2, %4, %cst {dimension_numbers = #tpu.dot_dimension_numbers<[1], [0], [0], [1], [0, 0, 1, 1], [], []>} : vector<20x22xf32>, vector<22x320xf32>, vector<20x320xf32> -> vector<20x320xf32>
    %6 = vector.extract_strided_slice %1 {offsets = [1, 0], sizes = [20, 22], strides = [1, 1]} : vector<22x22xf32> to vector<20x22xf32>
    %c1 = arith.constant 1 : index
    %c0_5 = arith.constant 0 : index
    %c0_6 = arith.constant 0 : index
    %7 = vector.load %arg2[%c1, %c0_5, %c0_6] : memref<3x22x320xf32, #tpu.memory_space<vmem>>, vector<1x22x320xf32>
    %8 = vector.shape_cast %7 : vector<1x22x320xf32> to vector<22x320xf32>
    %cst_7 = arith.constant dense<0.000000e+00> : vector<20x320xf32>
    %9 = tpu.matmul %6, %8, %cst_7 {dimension_numbers = #tpu.dot_dimension_numbers<[1], [0], [0], [1], [0, 0, 1, 1], [], []>} : vector<20x22xf32>, vector<22x320xf32>, vector<20x320xf32> -> vector<20x320xf32>
    %10 = arith.addf %5, %9 : vector<20x320xf32>
    %11 = vector.extract_strided_slice %1 {offsets = [2, 0], sizes = [20, 22], strides = [1, 1]} : vector<22x22xf32> to vector<20x22xf32>
    %c2 = arith.constant 2 : index
    %c0_8 = arith.constant 0 : index
    %c0_9 = arith.constant 0 : index
    %12 = vector.load %arg2[%c2, %c0_8, %c0_9] : memref<3x22x320xf32, #tpu.memory_space<vmem>>, vector<1x22x320xf32>
    %13 = vector.shape_cast %12 : vector<1x22x320xf32> to vector<22x320xf32>
    %cst_10 = arith.constant dense<0.000000e+00> : vector<20x320xf32>
    %14 = tpu.matmul %11, %13, %cst_10 {dimension_numbers = #tpu.dot_dimension_numbers<[1], [0], [0], [1], [0, 0, 1, 1], [], []>} : vector<20x22xf32>, vector<22x320xf32>, vector<20x320xf32> -> vector<20x320xf32>
    %15 = arith.addf %10, %14 : vector<20x320xf32>
    %c0_11 = arith.constant 0 : index
    %c0_12 = arith.constant 0 : index
    %16 = vector.load %arg3[%c0_11, %c0_12] : memref<1x320xf32, #tpu.memory_space<vmem>>, vector<1x320xf32>
    %17 = vector.broadcast %16 : vector<1x320xf32> to vector<20x320xf32>
    %18 = arith.addf %15, %17 : vector<20x320xf32>
    %cst_13 = arith.constant 0.000000e+00 : f32
    %19 = vector.broadcast %cst_13 : f32 to vector<20x320xf32>
    %20 = arith.maximumf %18, %19 : vector<20x320xf32>
    %c0_14 = arith.constant 0 : index
    %c0_15 = arith.constant 0 : index
    %21 = vector.load %arg4[%c0_14, %c0_15] : memref<10x20xf32, #tpu.memory_space<vmem>>, vector<10x20xf32>
    %cst_16 = arith.constant dense<0.000000e+00> : vector<10x320xf32>
    %22 = tpu.matmul %21, %20, %cst_16 {dimension_numbers = #tpu.dot_dimension_numbers<[1], [0], [0], [1], [0, 0, 1, 1], [], []>} : vector<10x20xf32>, vector<20x320xf32>, vector<10x320xf32> -> vector<10x320xf32>
    %c0_17 = arith.constant 0 : index
    %c0_18 = arith.constant 0 : index
    %23 = vector.load %arg5[%c0_17, %c0_18] : memref<10x20xf32, #tpu.memory_space<vmem>>, vector<10x20xf32>
    %cst_19 = arith.constant dense<0.000000e+00> : vector<10x320xf32>
    %24 = tpu.matmul %23, %20, %cst_19 {dimension_numbers = #tpu.dot_dimension_numbers<[1], [0], [0], [1], [0, 0, 1, 1], [], []>} : vector<10x20xf32>, vector<20x320xf32>, vector<10x320xf32> -> vector<10x320xf32>
    %25 = arith.maximumf %22, %24 : vector<10x320xf32>
    %c0_20 = arith.constant 0 : index
    %c0_21 = arith.constant 0 : index
    %26 = vector.load %arg6[%c0_20, %c0_21] : memref<320x160xf32, #tpu.memory_space<vmem>>, vector<320x160xf32>
    %cst_22 = arith.constant dense<0.000000e+00> : vector<10x160xf32>
    %27 = tpu.matmul %25, %26, %cst_22 {dimension_numbers = #tpu.dot_dimension_numbers<[1], [0], [0], [1], [0, 0, 1, 1], [], []>} : vector<10x320xf32>, vector<320x160xf32>, vector<10x160xf32> -> vector<10x160xf32>
    %c0_23 = arith.constant 0 : index
    %c0_24 = arith.constant 0 : index
    %28 = vector.load %arg7[%c0_23, %c0_24] : memref<320x160xf32, #tpu.memory_space<vmem>>, vector<320x160xf32>
    %cst_25 = arith.constant dense<0.000000e+00> : vector<10x160xf32>
    %29 = tpu.matmul %25, %28, %cst_25 {dimension_numbers = #tpu.dot_dimension_numbers<[1], [0], [0], [1], [0, 0, 1, 1], [], []>} : vector<10x320xf32>, vector<320x160xf32>, vector<10x160xf32> -> vector<10x160xf32>
    %30 = arith.maximumf %27, %29 : vector<10x160xf32>
    %31 = vector.extract_strided_slice %30 {offsets = [0, 0], sizes = [8, 160], strides = [1, 1]} : vector<10x160xf32> to vector<8x160xf32>
    %c0_26 = arith.constant 0 : index
    %c0_27 = arith.constant 0 : index
    %c0_28 = arith.constant 0 : index
    %32 = vector.load %arg8[%c0_26, %c0_27, %c0_28] : memref<3x160x256xf32, #tpu.memory_space<vmem>>, vector<1x160x256xf32>
    %33 = vector.shape_cast %32 : vector<1x160x256xf32> to vector<160x256xf32>
    %cst_29 = arith.constant dense<0.000000e+00> : vector<8x256xf32>
    %34 = tpu.matmul %31, %33, %cst_29 {dimension_numbers = #tpu.dot_dimension_numbers<[1], [0], [0], [1], [0, 0, 1, 1], [], []>} : vector<8x160xf32>, vector<160x256xf32>, vector<8x256xf32> -> vector<8x256xf32>
    %35 = vector.extract_strided_slice %30 {offsets = [1, 0], sizes = [8, 160], strides = [1, 1]} : vector<10x160xf32> to vector<8x160xf32>
    %c1_30 = arith.constant 1 : index
    %c0_31 = arith.constant 0 : index
    %c0_32 = arith.constant 0 : index
    %36 = vector.load %arg8[%c1_30, %c0_31, %c0_32] : memref<3x160x256xf32, #tpu.memory_space<vmem>>, vector<1x160x256xf32>
    %37 = vector.shape_cast %36 : vector<1x160x256xf32> to vector<160x256xf32>
    %cst_33 = arith.constant dense<0.000000e+00> : vector<8x256xf32>
    %38 = tpu.matmul %35, %37, %cst_33 {dimension_numbers = #tpu.dot_dimension_numbers<[1], [0], [0], [1], [0, 0, 1, 1], [], []>} : vector<8x160xf32>, vector<160x256xf32>, vector<8x256xf32> -> vector<8x256xf32>
    %39 = arith.addf %34, %38 : vector<8x256xf32>
    %40 = vector.extract_strided_slice %30 {offsets = [2, 0], sizes = [8, 160], strides = [1, 1]} : vector<10x160xf32> to vector<8x160xf32>
    %c2_34 = arith.constant 2 : index
    %c0_35 = arith.constant 0 : index
    %c0_36 = arith.constant 0 : index
    %41 = vector.load %arg8[%c2_34, %c0_35, %c0_36] : memref<3x160x256xf32, #tpu.memory_space<vmem>>, vector<1x160x256xf32>
    %42 = vector.shape_cast %41 : vector<1x160x256xf32> to vector<160x256xf32>
    %cst_37 = arith.constant dense<0.000000e+00> : vector<8x256xf32>
    %43 = tpu.matmul %40, %42, %cst_37 {dimension_numbers = #tpu.dot_dimension_numbers<[1], [0], [0], [1], [0, 0, 1, 1], [], []>} : vector<8x160xf32>, vector<160x256xf32>, vector<8x256xf32> -> vector<8x256xf32>
    %44 = arith.addf %39, %43 : vector<8x256xf32>
    %c0_38 = arith.constant 0 : index
    %c0_39 = arith.constant 0 : index
    %45 = vector.load %arg9[%c0_38, %c0_39] : memref<1x256xf32, #tpu.memory_space<vmem>>, vector<1x256xf32>
    %46 = vector.broadcast %45 : vector<1x256xf32> to vector<8x256xf32>
    %47 = arith.addf %44, %46 : vector<8x256xf32>
    %cst_40 = arith.constant 0.000000e+00 : f32
    %48 = vector.broadcast %cst_40 : f32 to vector<8x256xf32>
    %49 = arith.maximumf %47, %48 : vector<8x256xf32>
    %c0_41 = arith.constant 0 : index
    %c0_42 = arith.constant 0 : index
    %50 = vector.load %arg10[%c0_41, %c0_42] : memref<4x8xf32, #tpu.memory_space<vmem>>, vector<4x8xf32>
    %cst_43 = arith.constant dense<0.000000e+00> : vector<4x256xf32>
    %51 = tpu.matmul %50, %49, %cst_43 {dimension_numbers = #tpu.dot_dimension_numbers<[1], [0], [0], [1], [0, 0, 1, 1], [], []>} : vector<4x8xf32>, vector<8x256xf32>, vector<4x256xf32> -> vector<4x256xf32>
    %c0_44 = arith.constant 0 : index
    %c0_45 = arith.constant 0 : index
    %52 = vector.load %arg11[%c0_44, %c0_45] : memref<4x8xf32, #tpu.memory_space<vmem>>, vector<4x8xf32>
    %cst_46 = arith.constant dense<0.000000e+00> : vector<4x256xf32>
    %53 = tpu.matmul %52, %49, %cst_46 {dimension_numbers = #tpu.dot_dimension_numbers<[1], [0], [0], [1], [0, 0, 1, 1], [], []>} : vector<4x8xf32>, vector<8x256xf32>, vector<4x256xf32> -> vector<4x256xf32>
    %54 = arith.maximumf %51, %53 : vector<4x256xf32>
    %c0_47 = arith.constant 0 : index
    %c0_48 = arith.constant 0 : index
    %55 = vector.load %arg12[%c0_47, %c0_48] : memref<256x128xf32, #tpu.memory_space<vmem>>, vector<256x128xf32>
    %cst_49 = arith.constant dense<0.000000e+00> : vector<4x128xf32>
    %56 = tpu.matmul %54, %55, %cst_49 {dimension_numbers = #tpu.dot_dimension_numbers<[1], [0], [0], [1], [0, 0, 1, 1], [], []>} : vector<4x256xf32>, vector<256x128xf32>, vector<4x128xf32> -> vector<4x128xf32>
    %c0_50 = arith.constant 0 : index
    %c0_51 = arith.constant 0 : index
    %57 = vector.load %arg13[%c0_50, %c0_51] : memref<256x128xf32, #tpu.memory_space<vmem>>, vector<256x128xf32>
    %cst_52 = arith.constant dense<0.000000e+00> : vector<4x128xf32>
    %58 = tpu.matmul %54, %57, %cst_52 {dimension_numbers = #tpu.dot_dimension_numbers<[1], [0], [0], [1], [0, 0, 1, 1], [], []>} : vector<4x256xf32>, vector<256x128xf32>, vector<4x128xf32> -> vector<4x128xf32>
    %59 = arith.maximumf %56, %58 : vector<4x128xf32>
    %60 = vector.extract_strided_slice %59 {offsets = [0, 0], sizes = [2, 128], strides = [1, 1]} : vector<4x128xf32> to vector<2x128xf32>
    %c0_53 = arith.constant 0 : index
    %c0_54 = arith.constant 0 : index
    %c0_55 = arith.constant 0 : index
    %61 = vector.load %arg14[%c0_53, %c0_54, %c0_55] : memref<3x128x128xf32, #tpu.memory_space<vmem>>, vector<1x128x128xf32>
    %62 = vector.shape_cast %61 : vector<1x128x128xf32> to vector<128x128xf32>
    %cst_56 = arith.constant dense<0.000000e+00> : vector<2x128xf32>
    %63 = tpu.matmul %60, %62, %cst_56 {dimension_numbers = #tpu.dot_dimension_numbers<[1], [0], [0], [1], [0, 0, 1, 1], [], []>} : vector<2x128xf32>, vector<128x128xf32>, vector<2x128xf32> -> vector<2x128xf32>
    %64 = vector.extract_strided_slice %59 {offsets = [1, 0], sizes = [2, 128], strides = [1, 1]} : vector<4x128xf32> to vector<2x128xf32>
    %c1_57 = arith.constant 1 : index
    %c0_58 = arith.constant 0 : index
    %c0_59 = arith.constant 0 : index
    %65 = vector.load %arg14[%c1_57, %c0_58, %c0_59] : memref<3x128x128xf32, #tpu.memory_space<vmem>>, vector<1x128x128xf32>
    %66 = vector.shape_cast %65 : vector<1x128x128xf32> to vector<128x128xf32>
    %cst_60 = arith.constant dense<0.000000e+00> : vector<2x128xf32>
    %67 = tpu.matmul %64, %66, %cst_60 {dimension_numbers = #tpu.dot_dimension_numbers<[1], [0], [0], [1], [0, 0, 1, 1], [], []>} : vector<2x128xf32>, vector<128x128xf32>, vector<2x128xf32> -> vector<2x128xf32>
    %68 = arith.addf %63, %67 : vector<2x128xf32>
    %69 = vector.extract_strided_slice %59 {offsets = [2, 0], sizes = [2, 128], strides = [1, 1]} : vector<4x128xf32> to vector<2x128xf32>
    %c2_61 = arith.constant 2 : index
    %c0_62 = arith.constant 0 : index
    %c0_63 = arith.constant 0 : index
    %70 = vector.load %arg14[%c2_61, %c0_62, %c0_63] : memref<3x128x128xf32, #tpu.memory_space<vmem>>, vector<1x128x128xf32>
    %71 = vector.shape_cast %70 : vector<1x128x128xf32> to vector<128x128xf32>
    %cst_64 = arith.constant dense<0.000000e+00> : vector<2x128xf32>
    %72 = tpu.matmul %69, %71, %cst_64 {dimension_numbers = #tpu.dot_dimension_numbers<[1], [0], [0], [1], [0, 0, 1, 1], [], []>} : vector<2x128xf32>, vector<128x128xf32>, vector<2x128xf32> -> vector<2x128xf32>
    %73 = arith.addf %68, %72 : vector<2x128xf32>
    %c0_65 = arith.constant 0 : index
    %c0_66 = arith.constant 0 : index
    %74 = vector.load %arg15[%c0_65, %c0_66] : memref<1x128xf32, #tpu.memory_space<vmem>>, vector<1x128xf32>
    %75 = vector.broadcast %74 : vector<1x128xf32> to vector<2x128xf32>
    %76 = arith.addf %73, %75 : vector<2x128xf32>
    %cst_67 = arith.constant 0.000000e+00 : f32
    %77 = vector.broadcast %cst_67 : f32 to vector<2x128xf32>
    %78 = arith.maximumf %76, %77 : vector<2x128xf32>
    %cst_68 = arith.constant dense<0.000000e+00> : vector<128xf32>
    %79 = vector.multi_reduction <add>, %78, %cst_68 [0] : vector<2x128xf32> to vector<128xf32>
    %80 = vector.shape_cast %79 : vector<128xf32> to vector<1x128xf32>
    %c0_69 = arith.constant 0 : index
    %c0_70 = arith.constant 0 : index
    %81 = vector.load %arg16[%c0_69, %c0_70] : memref<128x64xf32, #tpu.memory_space<vmem>>, vector<128x64xf32>
    %cst_71 = arith.constant dense<0.000000e+00> : vector<1x64xf32>
    %82 = tpu.matmul %80, %81, %cst_71 {dimension_numbers = #tpu.dot_dimension_numbers<[1], [0], [0], [1], [0, 0, 1, 1], [], []>} : vector<1x128xf32>, vector<128x64xf32>, vector<1x64xf32> -> vector<1x64xf32>
    %c0_72 = arith.constant 0 : index
    %c0_73 = arith.constant 0 : index
    %83 = vector.load %arg17[%c0_72, %c0_73] : memref<64x128xf32, #tpu.memory_space<vmem>>, vector<64x128xf32>
    %cst_74 = arith.constant dense<0.000000e+00> : vector<1x128xf32>
    %84 = tpu.matmul %82, %83, %cst_74 {dimension_numbers = #tpu.dot_dimension_numbers<[1], [0], [0], [1], [0, 0, 1, 1], [], []>} : vector<1x64xf32>, vector<64x128xf32>, vector<1x128xf32> -> vector<1x128xf32>
    %c0_75 = arith.constant 0 : index
    %c0_76 = arith.constant 0 : index
    %85 = vector.load %arg18[%c0_75, %c0_76] : memref<1x128xf32, #tpu.memory_space<vmem>>, vector<1x128xf32>
    %86 = arith.addf %84, %85 : vector<1x128xf32>
    %cst_77 = arith.constant 0.000000e+00 : f32
    %87 = vector.broadcast %cst_77 : f32 to vector<1x128xf32>
    %88 = arith.maximumf %86, %87 : vector<1x128xf32>
    %c0_78 = arith.constant 0 : index
    %c0_79 = arith.constant 0 : index
    %89 = vector.load %arg19[%c0_78, %c0_79] : memref<128x50xf32, #tpu.memory_space<vmem>>, vector<128x50xf32>
    %cst_80 = arith.constant dense<0.000000e+00> : vector<1x50xf32>
    %90 = tpu.matmul %88, %89, %cst_80 {dimension_numbers = #tpu.dot_dimension_numbers<[1], [0], [0], [1], [0, 0, 1, 1], [], []>} : vector<1x128xf32>, vector<128x50xf32>, vector<1x50xf32> -> vector<1x50xf32>
    %c0_81 = arith.constant 0 : index
    %c0_82 = arith.constant 0 : index
    %91 = vector.load %arg20[%c0_81, %c0_82] : memref<1x50xf32, #tpu.memory_space<vmem>>, vector<1x50xf32>
    %92 = arith.addf %90, %91 : vector<1x50xf32>
    %c0_83 = arith.constant 0 : index
    %c0_84 = arith.constant 0 : index
    %c0_85 = arith.constant 0 : index
    %93 = vector.load %arg21[%c0_83, %c0_84, %c0_85] : memref<1x1x50xf32, #tpu.memory_space<vmem>>, vector<1x1x50xf32>
    %94 = vector.shape_cast %93 : vector<1x1x50xf32> to vector<1x50xf32>
    %95 = vector.shape_cast %92 : vector<1x50xf32> to vector<1x1x50xf32>
    tpu.vector_store %arg21[%c0_83, %c0_84, %c0_85], %95 {strides = array<i32>} : memref<1x1x50xf32, #tpu.memory_space<vmem>>, vector<1x1x50xf32>,
    return
  }
  func.func @transform_0(%arg0: i32) -> (i32, i32, i32) {
    %c0_i32 = arith.constant 0 : i32
    %c0_i32_0 = arith.constant 0 : i32
    %c0_i32_1 = arith.constant 0 : i32
    return %arg0, %c0_i32, %c0_i32_0 : i32, i32, i32
  }
  func.func @transform_1(%arg0: i32) -> (i32, i32, i32) {
    %c0_i32 = arith.constant 0 : i32
    %c0_i32_0 = arith.constant 0 : i32
    %c0_i32_1 = arith.constant 0 : i32
    %c0_i32_2 = arith.constant 0 : i32
    return %c0_i32, %c0_i32_0, %c0_i32_1 : i32, i32, i32
  }
  func.func @transform_2(%arg0: i32) -> (i32, i32) {
    %c0_i32 = arith.constant 0 : i32
    %c0_i32_0 = arith.constant 0 : i32
    %c0_i32_1 = arith.constant 0 : i32
    return %c0_i32, %c0_i32_0 : i32, i32
  }
  func.func @transform_3(%arg0: i32) -> (i32, i32) {
    %c0_i32 = arith.constant 0 : i32
    %c0_i32_0 = arith.constant 0 : i32
    %c0_i32_1 = arith.constant 0 : i32
    return %c0_i32, %c0_i32_0 : i32, i32
  }
  func.func @transform_4(%arg0: i32) -> (i32, i32) {
    %c0_i32 = arith.constant 0 : i32
    %c0_i32_0 = arith.constant 0 : i32
    %c0_i32_1 = arith.constant 0 : i32
    return %c0_i32, %c0_i32_0 : i32, i32
  }
  func.func @transform_5(%arg0: i32) -> (i32, i32) {
    %c0_i32 = arith.constant 0 : i32
    %c0_i32_0 = arith.constant 0 : i32
    %c0_i32_1 = arith.constant 0 : i32
    return %c0_i32, %c0_i32_0 : i32, i32
  }
  func.func @transform_6(%arg0: i32) -> (i32, i32) {
    %c0_i32 = arith.constant 0 : i32
    %c0_i32_0 = arith.constant 0 : i32
    %c0_i32_1 = arith.constant 0 : i32
    return %c0_i32, %c0_i32_0 : i32, i32
  }
  func.func @transform_7(%arg0: i32) -> (i32, i32, i32) {
    %c0_i32 = arith.constant 0 : i32
    %c0_i32_0 = arith.constant 0 : i32
    %c0_i32_1 = arith.constant 0 : i32
    %c0_i32_2 = arith.constant 0 : i32
    return %c0_i32, %c0_i32_0, %c0_i32_1 : i32, i32, i32
  }
  func.func @transform_8(%arg0: i32) -> (i32, i32) {
    %c0_i32 = arith.constant 0 : i32
    %c0_i32_0 = arith.constant 0 : i32
    %c0_i32_1 = arith.constant 0 : i32
    return %c0_i32, %c0_i32_0 : i32, i32
  }
  func.func @transform_9(%arg0: i32) -> (i32, i32) {
    %c0_i32 = arith.constant 0 : i32
    %c0_i32_0 = arith.constant 0 : i32
    %c0_i32_1 = arith.constant 0 : i32
    return %c0_i32, %c0_i32_0 : i32, i32
  }
  func.func @transform_10(%arg0: i32) -> (i32, i32) {
    %c0_i32 = arith.constant 0 : i32
    %c0_i32_0 = arith.constant 0 : i32
    %c0_i32_1 = arith.constant 0 : i32
    return %c0_i32, %c0_i32_0 : i32, i32
  }
  func.func @transform_11(%arg0: i32) -> (i32, i32) {
    %c0_i32 = arith.constant 0 : i32
    %c0_i32_0 = arith.constant 0 : i32
    %c0_i32_1 = arith.constant 0 : i32
    return %c0_i32, %c0_i32_0 : i32, i32
  }
  func.func @transform_12(%arg0: i32) -> (i32, i32) {
    %c0_i32 = arith.constant 0 : i32
    %c0_i32_0 = arith.constant 0 : i32
    %c0_i32_1 = arith.constant 0 : i32
    return %c0_i32, %c0_i32_0 : i32, i32
  }
  func.func @transform_13(%arg0: i32) -> (i32, i32, i32) {
    %c0_i32 = arith.constant 0 : i32
    %c0_i32_0 = arith.constant 0 : i32
    %c0_i32_1 = arith.constant 0 : i32
    %c0_i32_2 = arith.constant 0 : i32
    return %c0_i32, %c0_i32_0, %c0_i32_1 : i32, i32, i32
  }
  func.func @transform_14(%arg0: i32) -> (i32, i32) {
    %c0_i32 = arith.constant 0 : i32
    %c0_i32_0 = arith.constant 0 : i32
    %c0_i32_1 = arith.constant 0 : i32
    return %c0_i32, %c0_i32_0 : i32, i32
  }
  func.func @transform_15(%arg0: i32) -> (i32, i32) {
    %c0_i32 = arith.constant 0 : i32
    %c0_i32_0 = arith.constant 0 : i32
    %c0_i32_1 = arith.constant 0 : i32
    return %c0_i32, %c0_i32_0 : i32, i32
  }
  func.func @transform_16(%arg0: i32) -> (i32, i32) {
    %c0_i32 = arith.constant 0 : i32
    %c0_i32_0 = arith.constant 0 : i32
    %c0_i32_1 = arith.constant 0 : i32
    return %c0_i32, %c0_i32_0 : i32, i32
  }
  func.func @transform_17(%arg0: i32) -> (i32, i32) {
    %c0_i32 = arith.constant 0 : i32
    %c0_i32_0 = arith.constant 0 : i32
    %c0_i32_1 = arith.constant 0 : i32
    return %c0_i32, %c0_i32_0 : i32, i32
  }
  func.func @transform_18(%arg0: i32) -> (i32, i32) {
    %c0_i32 = arith.constant 0 : i32
    %c0_i32_0 = arith.constant 0 : i32
    %c0_i32_1 = arith.constant 0 : i32
    return %c0_i32, %c0_i32_0 : i32, i32
  }
  func.func @transform_19(%arg0: i32) -> (i32, i32) {
    %c0_i32 = arith.constant 0 : i32
    %c0_i32_0 = arith.constant 0 : i32
    %c0_i32_1 = arith.constant 0 : i32
    return %c0_i32, %c0_i32_0 : i32, i32
  }
  func.func @transform_20(%arg0: i32) -> (i32, i32, i32) {
    %c0_i32 = arith.constant 0 : i32
    %c0_i32_0 = arith.constant 0 : i32
    %c0_i32_1 = arith.constant 0 : i32
    return %arg0, %c0_i32, %c0_i32_0 : i32, i32, i32
  }
}

</mosaic_0001>

<bundles_post_ra>
// kernel: tile.18
= control target key start
LH: loop header
LB: loop body
LE: loop exit
PB: predicated region body
PF: predicated region fallthrough
CT: control target
= control target key end

     0   :  { %s34_s0 = inlined_call_operand.vmem [shape: f32[16], index: 0, kind: input, shape index: {}]   ;;  %s35_s1 = inlined_call_operand.vmem [shape: f32[20,16], index: 1, kind: output, shape index: {}]  }
   0x1   :  { %v4_v0 = vld [vmem:[%s34_s0] ss:$0 sm:$0xff] }
   0x2   :  { %5 = vst [vmem:[%s35_s1] sm:$0xff] %v4_v0 }
   0x3   :  { %10 = vst [vmem:[%s35_s1 + $0x8] sm:$0xff] %v4_v0 }
   0x4   :  { %11 = vst [vmem:[%s35_s1 + $0x10] sm:$0xff] %v4_v0 }

// kernel: tile.19
= control target key start
LH: loop header
LB: loop body
LE: loop exit
PB: predicated region body
PF: predicated region fallthrough
CT: control target
= control target key end

     0   :  { %s6_s6 = smov 3  ;;  %s20_s9 = smov 3  ;;  %vm3_vm0 = vcmask 130048   ;;  %vm10_vm1 = vcmask 1048448   ;;  %vm17_vm2 = vcmask 917248   ;;  %vm24_vm3 = vcmask 786048   ;;  %s135_s0 = inlined_call_operand.vmem [shape: f32[20,16], index: 0, kind: input, shape index: {}]   ;;  %s136_s1 = inlined_call_operand.vmem [shape: f32[1,320], index: 1, kind: output, shape index: {}]  }
   0x1   :  { %v69_v0 = vld [vmem:[%s135_s0 + $0x7] ss:$8 sm:%s6_s6]   ;;  %s85_s10 = smov 112   ;;  %v71_v1 = vld [vmem:[%s135_s0 + $0x5] ss:$8 sm:%s20_s9]   ;;  %s86_s13 = smov 80  }
   0x2   :  { %8 = vrot.lane.b32.xlu0 %v69_v0, %s85_s10  ;;  %22 = vrot.lane.b32.xlu1 %v71_v1, %s86_s13  ;;  %s13_s14 = smov 3  ;;  %v73_v2 = vld [vmem:[%s135_s0 + $0x3] ss:$8 sm:$0x7]   ;;  %s27_s17 = smov 3  ;;  %vm31_vm4 = vcmask 654848  }
   0x3   :  { %s87_s18 = smov 48   ;;  %v70_v3 = vld [vmem:[%s135_s0 + $0x6] ss:$8 sm:%s13_s14]   ;;  %v72_v4 = vld [vmem:[%s135_s0 + $0x4] ss:$8 sm:%s27_s17]   ;;  %s88_s23 = smov 96  }
   0x4   :  { %35 = vrot.lane.b32.xlu2 %v73_v2, %s87_s18  ;;  %s89_s24 = smov 64   ;;  %v74_v5 = vld [vmem:[%s135_s0 + $0x2] ss:$8 sm:$0x7]   ;;  %s90_s27 = smov 32   ;;  %vm37_vm5 = vcmask 523648  }
   0x5   :  { %v75_v6 = vld [vmem:[%s135_s0 + $0x1] ss:$8 sm:$0x7]   ;;  %s91_s30 = smov 16   ;;  %vm43_vm6 = vcmask 392448   ;;  %vm49_vm7 = vcmask 261248  }
   0x6   :  { %v2_v7 = vld [vmem:[%s135_s0] ss:$8 sm:$0x7]  }
   0x7   :  { %4 = vst.msk [vmem:[#allocation0] ss:$8 sm:$0x7] %vm3_vm0, %v2_v7  }
   0xa   :  { %15 = vrot.lane.b32.xlu0 %v70_v3, %s88_s23  ;;  %29 = vrot.lane.b32.xlu1 %v72_v4, %s89_s24 }
   0xc   :  { %41 = vrot.lane.b32.xlu2 %v74_v5, %s90_s27 }
  0x12   :  { %47 = vrot.lane.b32.xlu0 %v75_v6, %s91_s30 }
  0x5e   :  { %v36_v8 = vpop.permute.xlu2 %35  }
  0x66   :  { %v42_v9 = vpop.permute.xlu2 %41  }
  0x74   :  { %v9_v10 = vpop.permute.xlu0 %8   ;;  %v23_v11 = vpop.permute.xlu1 %22  }
  0x75   :  { %11 = vst.msk [vmem:[#allocation0] ss:$8 sm:$0x3] %vm10_vm1, %v9_v10  }
  0x7c   :  { %v16_v12 = vpop.permute.xlu0 %15   ;;  %v30_v13 = vpop.permute.xlu1 %29  }
  0x7d   :  { %18 = vst.msk [vmem:[#allocation0] ss:$8 sm:$0x3] %vm17_vm2, %v16_v12  }
  0x7e   :  { %25 = vst.msk [vmem:[#allocation0] ss:$8 sm:$0x3] %vm24_vm3, %v23_v11  }
  0x7f   :  { %32 = vst.msk [vmem:[#allocation0] ss:$8 sm:$0x3] %vm31_vm4, %v30_v13  }
  0x80   :  { %38 = vst.msk [vmem:[#allocation0] ss:$8 sm:$0x7] %vm37_vm5, %v36_v8  }
  0x81   :  { %44 = vst.msk [vmem:[#allocation0] ss:$8 sm:$0x7] %vm43_vm6, %v42_v9  }
  0x84   :  { %v48_v14 = vpop.permute.xlu0 %47  }
  0x85   :  { %50 = vst.msk [vmem:[#allocation0] ss:$8 sm:$0x7] %vm49_vm7, %v48_v14  }
  0x8c   :  { %v53_v15 = vld [vmem:[#allocation0] sm:$0x1]  ;;  %v58_v16 = vld [vmem:[#allocation0 + $0x8] sm:$0x1]  ;;  %v64_v17 = vld [vmem:[#allocation0 + $0x10] sm:$0x1] }
  0x8d   :  { %56 = vst [vmem:[%s136_s1] sm:$0x1] %v53_v15 }
  0x8e   :  { %76 = vst [vmem:[%s136_s1 + $0x1] sm:$0x1] %v58_v16 }
  0x8f   :  { %77 = vst [vmem:[%s136_s1 + $0x2] sm:$0x1] %v64_v17 }

// kernel: tile.23
= control target key start
LH: loop header
LB: loop body
LE: loop exit
PB: predicated region body
PF: predicated region fallthrough
CT: control target
= control target key end

     0   :  { %s22_s0 = inlined_call_operand.vmem [shape: f32[32], index: 0, kind: input, shape index: {}]   ;;  %s23_s1 = inlined_call_operand.vmem [shape: f32[8,32], index: 1, kind: output, shape index: {}]  }
   0x1   :  { %v4_v0 = vld [vmem:[%s22_s0] ss:$0 sm:$0xff] }
   0x2   :  { %5 = vst [vmem:[%s23_s1] sm:$0xff] %v4_v0 }

// kernel: tile.24
= control target key start
LH: loop header
LB: loop body
LE: loop exit
PB: predicated region body
PF: predicated region fallthrough
CT: control target
= control target key end

     0   :  { %s7_s6 = smov 3  ;;  %s46_s9 = smov 96   ;;  %vm4_vm0 = vcmask 261120   ;;  %vm11_vm1 = vcmask 1048320   ;;  %vm18_vm2 = vcmask 785920   ;;  %vm25_vm3 = vcmask 523520   ;;  %s77_s0 = inlined_call_operand.vmem [shape: f32[8,32], index: 0, kind: input, shape index: {}]   ;;  %s78_s1 = inlined_call_operand.vmem [shape: f32[1,256], index: 1, kind: output, shape index: {}]  }
   0x1   :  { %v39_v0 = vld [vmem:[%s77_s0 + $0x3] ss:$4 sm:%s7_s6]   ;;  %s21_s10 = smov 3  ;;  %s14_s13 = smov 3 }
   0x2   :  { %9 = vrot.lane.b32.xlu0 %v39_v0, %s46_s9  ;;  %v41_v1 = vld [vmem:[%s77_s0 + $0x1] ss:$4 sm:%s21_s10]   ;;  %s47_s14 = smov 32   ;;  %s48_s17 = smov 64  }
   0x3   :  { %23 = vrot.lane.b32.xlu1 %v41_v1, %s47_s14  ;;  %v40_v2 = vld [vmem:[%s77_s0 + $0x2] ss:$4 sm:%s14_s13]   ;;  %s2_s18 = smov 3 }
   0x4   :  { %v3_v3 = vld [vmem:[%s77_s0] ss:$4 sm:%s2_s18]  }
   0x5   :  { %5 = vst.msk [vmem:[#allocation0] ss:$8 sm:$0x3] %vm4_vm0, %v3_v3  }
   0xa   :  { %16 = vrot.lane.b32.xlu0 %v40_v2, %s48_s17 }
  0x74   :  { %v10_v4 = vpop.permute.xlu0 %9  }
  0x75   :  { %12 = vst.msk [vmem:[#allocation0] ss:$8 sm:$0x3] %vm11_vm1, %v10_v4   ;;  %v24_v5 = vpop.permute.xlu1 %23  }
  0x7c   :  { %v17_v6 = vpop.permute.xlu0 %16  }
  0x7d   :  { %19 = vst.msk [vmem:[#allocation0] ss:$8 sm:$0x3] %vm18_vm2, %v17_v6  }
  0x7e   :  { %26 = vst.msk [vmem:[#allocation0] ss:$8 sm:$0x3] %vm25_vm3, %v24_v5  }
  0x85   :  { %v29_v7 = vld [vmem:[#allocation0] sm:$0x1]  ;;  %v34_v8 = vld [vmem:[#allocation0 + $0x8] sm:$0x1] }
  0x86   :  { %32 = vst [vmem:[%s78_s1] sm:$0x1] %v29_v7 }
  0x87   :  { %42 = vst [vmem:[%s78_s1 + $0x1] sm:$0x1] %v34_v8 }

// kernel: tile.28
= control target key start
LH: loop header
LB: loop body
LE: loop exit
PB: predicated region body
PF: predicated region fallthrough
CT: control target
= control target key end

     0   :  { %s22_s0 = inlined_call_operand.vmem [shape: f32[64], index: 0, kind: input, shape index: {}]   ;;  %s23_s1 = inlined_call_operand.vmem [shape: f32[2,64], index: 1, kind: output, shape index: {}]  }
   0x1   :  { %v4_v0 = vld [vmem:[%s22_s0] ss:$0 sm:$0xff] }
   0x2   :  { %5 = vst [vmem:[%s23_s1] sm:$0x3] %v4_v0 }

// kernel: tile.29
= control target key start
LH: loop header
LB: loop body
LE: loop exit
PB: predicated region body
PF: predicated region fallthrough
CT: control target
= control target key end

     0   :  { %vm7_vm0 = vcmask 523264   ;;  %vm13_vm1 = vcmask 1048064   ;;  %s39_s0 = inlined_call_operand.vmem [shape: f32[2,64], index: 0, kind: input, shape index: {}]   ;;  %s40_s1 = inlined_call_operand.vmem [shape: f32[1,128], index: 1, kind: output, shape index: {}]  }
   0x1   :  { %v4_v0 = vld [vmem:[%s39_s0] sm:$0x3]  ;;  %s22_s0 = smov 64  }
   0x2   :  { %5 = vst [vmem:[#allocation1] sm:$0x3] %v4_v0 }
   0x9   :  { %v10_v1 = vld [vmem:[#allocation1 + $0x1] sm:$0x1]   ;;  %v6_v2 = vld [vmem:[#allocation1] sm:$0x1]  }
   0xa   :  { %11 = vrot.lane.b32.xlu0 %v10_v1, %s22_s0  ;;  %8 = vst.msk [vmem:[#allocation0] sm:$0x1] %vm7_vm0, %v6_v2  }
  0x7c   :  { %v12_v3 = vpop.permute.xlu0 %11  }
  0x7d   :  { %14 = vst.msk [vmem:[#allocation0] sm:$0x1] %vm13_vm1, %v12_v3  }
  0x84   :  { %v17_v4 = vld [vmem:[#allocation0] sm:$0x1] }
  0x85   :  { %20 = vst [vmem:[%s40_s1] sm:$0x1] %v17_v4 }

// kernel: sound_cnn_forward.1
= control target key start
LH: loop header
LB: loop body
LE: loop exit
PB: predicated region body
PF: predicated region fallthrough
CT: control target
= control target key end

     0   :  { %s4653_s0 = inlined_call_operand.vmem [shape: f32[2,22,22], index: 0, kind: input, shape index: {}]   ;;  %s4654_s1 = inlined_call_operand.vmem [shape: f32[3,22,320], index: 1, kind: input, shape index: {}]   ;;  %s4655_s2 = inlined_call_operand.vmem [shape: f32[1,320], index: 2, kind: input, shape index: {}]   ;;  %s4656_s3 = inlined_call_operand.vmem [shape: f32[10,20], index: 3, kind: input, shape index: {}]   ;;  %s4657_s4 = inlined_call_operand.vmem [shape: f32[10,20], index: 4, kind: input, shape index: {}]   ;;  %s4658_s5 = inlined_call_operand.vmem [shape: f32[320,160], index: 5, kind: input, shape index: {}]   ;;  %s4659_s6 = inlined_call_operand.vmem [shape: f32[320,160], index: 6, kind: input, shape index: {}]   ;;  %s4660_s7 = inlined_call_operand.vmem [shape: f32[3,160,256], index: 7, kind: input, shape index: {}]   ;;  %s4661_s8 = inlined_call_operand.vmem [shape: f32[1,256], index: 8, kind: input, shape index: {}]   ;;  %s4662_s9 = inlined_call_operand.vmem [shape: f32[4,8], index: 9, kind: input, shape index: {}]   ;;  %s4663_s10 = inlined_call_operand.vmem [shape: f32[4,8], index: 10, kind: input, shape index: {}]   ;;  %s4664_s11 = inlined_call_operand.vmem [shape: f32[256,128], index: 11, kind: input, shape index: {}]   ;;  %s4665_s12 = inlined_call_operand.vmem [shape: f32[256,128], index: 12, kind: input, shape index: {}]   ;;  %s4666_s13 = inlined_call_operand.vmem [shape: f32[3,128,128], index: 13, kind: input, shape index: {}]   ;;  %s4667_s14 = inlined_call_operand.vmem [shape: f32[1,128], index: 14, kind: input, shape index: {}]   ;;  %s4668_s15 = inlined_call_operand.vmem [shape: f32[128,64], index: 15, kind: input, shape index: {}]   ;;  %s4669_s16 = inlined_call_operand.vmem [shape: f32[64,128], index: 16, kind: input, shape index: {}]   ;;  %s4670_s17 = inlined_call_operand.vmem [shape: f32[1,128], index: 17, kind: input, shape index: {}]   ;;  %s4671_s18 = inlined_call_operand.vmem [shape: f32[128,50], index: 18, kind: input, shape index: {}]   ;;  %s4672_s19 = inlined_call_operand.vmem [shape: f32[1,50], index: 19, kind: input, shape index: {}]   ;;  %s4673_s20 = inlined_call_operand.hbm [shape: f32[2,1,50], index: 20, kind: output, shape index: {}]  }
   0x1   :  { %4684 = sst [smem:[#allocation11_spill]] %s4653_s0 }
   0x2   :  { %4685 = sst [smem:[#allocation12_spill]] %s4654_s1 }
   0x3   :  { %4686 = sst [smem:[#allocation13_spill]] %s4655_s2 }
   0x4   :  { %4687 = sst [smem:[#allocation14_spill]] %s4656_s3 }
   0x5   :  { %4688 = sst [smem:[#allocation15_spill]] %s4657_s4 }
   0x6   :  { %4689 = sst [smem:[#allocation16_spill]] %s4658_s5 }
   0x7   :  { %4690 = sst [smem:[#allocation17_spill]] %s4659_s6 }
   0x8   :  { %4691 = sst [smem:[#allocation18_spill]] %s4660_s7 }
   0x9   :  { %25 = vsyncpa [#allocation3], 0 }
   0xa   :  { %27 = vsyncpa [#allocation3 + $0x1], 0  ;;  %s2968_s1 = smov 0   ;;  %s2970_s22 = smov 0  }
   0xb   :  { %s2972_s23 = smov 0   ;;  %s2974_s24 = smov 0  }
   0xc LB: > { %4692 = sst [smem:[#allocation5_spill]] %s2849_s1  ;;  %s2989_s2 = sadd.s32 4294967295, %s2861_s24   ;;  %s2861_s24 = sphi %s2974_s24, %s4713_s24   ;;  %s2857_s23 = sphi %s2972_s23, %s4715_s23   ;;  %s2853_s22 = sphi %s2970_s22, %s4717_s22   ;;  %s2849_s1 = sphi %s2968_s1, %s4716_s1  }
   0xd   : > { %4693 = sst [smem:[#allocation6_spill]] %s2857_s23  ;;  %s2548_s25 = sadd.s32 4294967294, %s2861_s24  }
   0xe   : > { %4694 = sst [smem:[#allocation7_spill]] %s2861_s24  ;;  %s2993_s3 = sadd.s32 1, %s2861_s24  }
   0xf   : > { %4695 = sst [smem:[#allocation8_spill]] %s2993_s3  ;;  %s465_s26 = sadd.s32 1, %s2857_s23 }
  0x10   : > { %s462_s27 = ssub.s32 %s2861_s24, %s2993_s3  ;;  %p475_p0 = scmp.ne.s32.totalorder %s2857_s23, %s2853_s22 }
  0x11   : > { %p463_p1 = scmp.eq.s32.totalorder %s462_s27, 0  ;;  %p476_p2 = scmp.eq.s32.totalorder %s2989_s2, 1 }
  0x12   : > { %p481_p3 = scmp.ne.s32.totalorder %s2853_s22, %s2849_s1  ;;  %p482_p4 = scmp.eq.s32.totalorder %s2548_s25, 1 }
  0x13   : > { %s3004_s28 = scalar_select %p463_p1, %s2857_s23, %s465_s26  }
  0x14   : > { %p3006_p5 = por %p476_p2, %p475_p0  ;;  %p3010_p6 = por %p482_p4, %p481_p3 }
  0x15   : > { %4696 = sst [smem:[#allocation9_spill]] %s3004_s28  ;;  %p2551_p7 = scmp.ge.s32.totalorder %s2861_s24, 1 }
  0x16   : > { %s4698_s29 = scalar_select %p3010_p6, 1, 0 }
  0x17   : > { %p565_p8 = scmp.lt.s32.totalorder %s2861_s24, 3 }
  0x18   : > { %4699 = sst [smem:[#allocation10_spill]] %s4698_s29 }
  0x19   : > { %p566_p9 = pnand %p2551_p7, %p565_p8 }
  0x1a   : > { %s4700_s21 = sld [smem:[#allocation12_spill]] (!%p566_p9)  ;;  %p622_p10 = scmp.lt.s32.totalorder (!%p566_p9), %s2989_s2, 1 }
  0x1b   : > { %569 = sbr.rel (%p566_p9) target bundleno = 1592 (0x638), region = 100  ;;  %s4702_s0 = sld [smem:[#allocation13_spill]] (!%p566_p9) }
  0x1c   : > { %s4703_s1 = sld [smem:[#allocation14_spill]] (!%p566_p9)  ;;  %s2819_s26 = scalar_lea.hbm (!%p566_p9), %s4673_s20, 2 }
  0x1d   : > { %s4705_s24 = sld [smem:[#allocation15_spill]] (!%p566_p9) }
  0x1e   : > { %s4707_s5 = sld [smem:[#allocation16_spill]] (!%p566_p9) }
  0x1f   : > { %s4708_s6 = sld [smem:[#allocation17_spill]] (!%p566_p9) }
  0x20   : > { %v636_v0 = vld [vmem:[%s4700_s21 + $0x30] sm:$0x3f]  ;;  %vm665_vm0 = vcmask 1045504   ;;  %v633_v1 = vld [vmem:[%s4700_s21 + $0x18] sm:$0xff]  ;;  %v2561_v3 = vld [vmem:[%s4700_s21 + $0x88] sm:$0x3f] }
  0x21   : > { %v2559_v2 = vld [vmem:[%s4700_s21 + $0x78] sm:$0x3f]  ;;  %2574 = vmatpush.msk.msra.mxu3 %vm665_vm0, %v636_v0  ;;  %v2556_v4 = vld [vmem:[%s4700_s21 + $0x60] sm:$0xff]  ;;  %2570 = vmatpush.msk.msra.mxu2 %vm665_vm0, %v2561_v3  ;;  %v2558_v6 = vld [vmem:[%s4700_s21 + $0x70] sm:$0xff]  ;;  %s623_s23 = scalar_select %p622_p10, %s2989_s2, 1  ;;  %vm658_vm1 = vcmask 179200  }
  0x22   : > { %2562 = vmatpush.msk.msra.mxu0 %vm665_vm0, %v2559_v2  ;;  %v630_v5 = vld [vmem:[%s4700_s21] sm:$0xff]  ;;  %v2553_v7 = vld [vmem:[%s4700_s21 + $0x48] sm:$0xff]  ;;  %v2555_v8 = vld [vmem:[%s4700_s21 + $0x58] sm:$0xff]  ;;  %vm652_vm2 = vcmask 1046528   ;;  %vm998_vm3 = vcmask 1043456   ;;  %vm991_vm4 = vcmask 162816  }
  0x23   : > { %782 = vmatpush.msra.mxu3 %v633_v1  ;;  %v2560_v9 = vld [vmem:[%s4700_s21 + $0x80] sm:$0x3f]  ;;  %v2593_v10 = vld [vmem:[%s4700_s21 + $0xc8] sm:$0x3f]  ;;  %741 = vmatpush.msra.mxu2 %v2558_v6  ;;  %v637_v12 = vld [vmem:[%s4700_s21 + $0x38] sm:$0x3f]  ;;  %s4706_s30 = smov %s4705_s24 }
  0x24   : > { %689 = vmatpush.msra.mxu0 %v2556_v4  ;;  %2566 = vmatpush.msk.msra.mxu1 %vm665_vm0, %v2560_v9  ;;  %v2557_v11 = vld [vmem:[%s4700_s21 + $0x68] sm:$0xff]  ;;  %s2758_s3 = smul.u32 24, %s623_s23  ;;  %v2590_v13 = vld [vmem:[%s4700_s21 + $0xb0] sm:$0xff]  ;;  %v2592_v14 = vld [vmem:[%s4700_s21 + $0xc0] sm:$0x3f]  ;;  %s4701_s23 = sld [smem:[#allocation11_spill]] }
  0x25   : > { %783 = vmatpush.msra.mxu3 %v630_v5  ;;  %742 = vmatpush.msra.mxu2 %v2555_v8  ;;  %v2554_v15 = vld [vmem:[%s4700_s21 + $0x50] sm:$0xff]  ;;  %v2587_v16 = vld [vmem:[%s4700_s21 + $0x98] sm:$0xff]  ;;  %v634_v17 = vld [vmem:[%s4700_s21 + $0x20] sm:$0xff]  ;;  %vm1240_vm5 = vcmask 523264   ;;  %s4709_s7 = sld [smem:[#allocation18_spill]]  ;;  %vm1699_vm6 = vcmask 261120  }
  0x26   : > { %690 = vmatpush.msra.mxu0 %v2553_v7  ;;  %715 = vmatpush.msra.mxu1 %v2557_v11  ;;  %v2589_v20 = vld [vmem:[%s4700_s21 + $0xa8] sm:$0xff]  ;;  %v2586_v26 = vld [vmem:[%s4700_s21 + $0x90] sm:$0xff]  ;;  %v638_v29 = vld [vmem:[%s4700_s21 + $0x40] sm:$0x3f]  ;;  %vm2007_vm7 = vcmask 64512   ;;  %vm2364_vm8 = vcmask 1041408  }
  0x27   : > { %2599 = vmatpush.msk.msrb.mxu3 %vm665_vm0, %v2593_v10  ;;  %2595 = vmatpush.msk.msrb.mxu2 %vm665_vm0, %v2592_v14  ;;  %v631_v24 = vld [vmem:[%s4700_s21 + $0x8] sm:$0xff]  ;;  %v2594_v31 = vld [vmem:[%s4700_s21 + $0xd0] sm:$0x3f]  ;;  %v2591_v33 = vld [vmem:[%s4700_s21 + $0xb8] sm:$0xff]  ;;  %vm2478_vm9 = vcmask 401408  }
  0x28   : > { %2578 = vmatpush.msk.msrb.mxu0 %vm665_vm0, %v637_v12  ;;  %716 = vmatpush.msra.mxu1 %v2554_v15  ;;  %v635_v30 = vld [vmem:[%s4700_s21 + $0x28] sm:$0xff]  ;;  %v632_v32 = vld [vmem:[%s4700_s21 + $0x10] sm:$0xff]  ;;  %v2588_v34 = vld [vmem:[%s4700_s21 + $0xa0] sm:$0xff] }
  0x29   : > { %916 = vmatpush.msrb.mxu3 %v2590_v13  ;;  %890 = vmatpush.msrb.mxu2 %v2589_v20  ;;  %v963_v62 = vld [vmem:[%s4702_s0] sm:$0x7]  ;;  %s620_s0 = sand.u32 1, %s2853_s22  }
  0x2a   : > { %s626_s27 = scalar_lea.vmem %s4701_s23, %s2758_s3  ;;  %808 = vmatpush.msrb.mxu0 %v634_v17  ;;  %2582 = vmatpush.msk.msrb.mxu1 %vm665_vm0, %v638_v29  ;;  %v966_v4 = vperm.slane %v963_v62, 1  ;;  %v965_v13 = vperm.slane %v963_v62, 0  ;;  %s4704_s3 = smov %s4703_s1 }
  0x2b   : > { %v627_v18 = vld [vmem:[%s626_s27] sm:$0xff]  ;;  %v628_v19 = vld [vmem:[%s626_s27 + $0x8] sm:$0xff]  ;;  %v629_v23 = vld [vmem:[%s626_s27 + $0x10] sm:$0x3f]  ;;  %917 = vmatpush.msrb.mxu3 %v2587_v16  ;;  %891 = vmatpush.msrb.mxu2 %v2586_v26  ;;  %s2481_s27 = scalar_lea.sflag [#allocation3], %s620_s0 }
  0x2c   : > { %2575 = vmatmul.msk.f32.vlgmr.msra.gmra.mxu3 %vm658_vm1, %v627_v18  ;;  %v653_v21 = vrot.slane %v627_v18, 1  ;;  %v654_v22 = vrot.slane %v628_v19, 1  ;;  %v656_v27 = vrot.slane %v629_v23, 1  ;;  %809 = vmatpush.msrb.mxu0 %v631_v24  ;;  %v856_v35 = vrot.slane %v627_v18, 2 }
  0x2d   : > { %834 = vmatpush.msrb.mxu1 %v635_v30  ;;  %v857_v36 = vrot.slane %v628_v19, 2  ;;  %v859_v38 = vrot.slane %v629_v23, 2  ;;  %v990_v30 = vld [vmem:[%s4704_s3 + $0x8] sm:$0x3]  ;;  %s621_s3 = scalar_lea.vmem [#allocation2], %s620_s0 }
  0x2e   : > { %v655_v25 = vsel %vm652_vm2, %v653_v21, %v654_v22  ;;  %v657_v28 = vsel %vm652_vm2, %v654_v22, %v656_v27  ;;  %s2491_s23 = sshll.u32 %s621_s3, 4  ;;  %s2492_s23 = int_to_ptr.vmem [resolvable:$true] %s2491_s23 }
  0x2f   : > { %2563 = vmatmul.msk.f32.vlgmr.msra.gmra.mxu0 %vm658_vm1, %v655_v25  ;;  %2571 = vmatmul.msk.f32.vlgmr.msra.gmra.mxu2 %vm658_vm1, %v655_v25  ;;  %v858_v37 = vsel %vm665_vm0, %v856_v35, %v857_v36  ;;  %v860_v39 = vsel %vm665_vm0, %v857_v36, %v859_v38 }
  0x30   : > { %2567 = vmatmul.msk.f32.vlgmr.msra.gmra.mxu1 %vm658_vm1, %v655_v25  ;;  %2603 = vmatpush.msk.msra.mxu0 %vm665_vm0, %v2594_v31  ;;  %v989_v25 = vld [vmem:[%s4703_s1] sm:$0xff]  ;;  %s2489_s1 = scalar_lea.hbm %s4673_s20, %s2989_s2 }
  0x31   : > { %835 = vmatpush.msrb.mxu1 %v632_v32 }
  0x32   : > { %942 = vmatpush.msra.mxu0 %v2591_v33 }
  0x34   : > { %2576 = vmatmul.msk.f32.gmra.mxu3 %vm658_vm1, %v628_v19  ;;  %943 = vmatpush.msra.mxu0 %v2588_v34 }
  0x37   : > { %2564 = vmatmul.msk.f32.gmra.mxu0 %vm658_vm1, %v657_v28  ;;  %2572 = vmatmul.msk.f32.gmra.mxu2 %vm658_vm1, %v657_v28 }
  0x38   : > { %2568 = vmatmul.msk.f32.gmra.mxu1 %vm658_vm1, %v657_v28 }
  0x3c   : > { %2577 = vmatmul.msk.f32.gmra.mxu3 %vm658_vm1, %v629_v23 }
  0x3f   : > { %2565 = vmatmul.msk.f32.gmra.mxu0 %vm658_vm1, %v656_v27  ;;  %2573 = vmatmul.msk.f32.gmra.mxu2 %vm658_vm1, %v656_v27 }
  0x40   : > { %2569 = vmatmul.msk.f32.gmra.mxu1 %vm658_vm1, %v656_v27 }
  0x44   : > { %2600 = vmatmul.msk.f32.vlgmr.msrb.gmra.mxu3 %vm658_vm1, %v858_v37 }
  0x47   : > { %2579 = vmatmul.msk.f32.vlgmr.msrb.gmra.mxu0 %vm658_vm1, %v627_v18  ;;  %2596 = vmatmul.msk.f32.vlgmr.msrb.gmra.mxu2 %vm658_vm1, %v858_v37 }
  0x48   : > { %2583 = vmatmul.msk.f32.vlgmr.msrb.gmra.mxu1 %vm658_vm1, %v627_v18 }
  0x4c   : > { %2601 = vmatmul.msk.f32.gmra.mxu3 %vm658_vm1, %v860_v39 }
  0x4f   : > { %2580 = vmatmul.msk.f32.gmra.mxu0 %vm658_vm1, %v628_v19  ;;  %2597 = vmatmul.msk.f32.gmra.mxu2 %vm658_vm1, %v860_v39 }
  0x50   : > { %2584 = vmatmul.msk.f32.gmra.mxu1 %vm658_vm1, %v628_v19 }
  0x54   : > { %2602 = vmatmul.msk.f32.gmra.mxu3 %vm658_vm1, %v859_v38 }
  0x57   : > { %2581 = vmatmul.msk.f32.gmra.mxu0 %vm658_vm1, %v629_v23  ;;  %2598 = vmatmul.msk.f32.gmra.mxu2 %vm658_vm1, %v859_v38 }
  0x58   : > { %2585 = vmatmul.msk.f32.gmra.mxu1 %vm658_vm1, %v629_v23 }
  0x5f   : > { %2604 = vmatmul.msk.f32.vlgmr.msra.gmra.mxu0 %vm658_vm1, %v858_v37  ;;  %v967_v37 = vperm.slane %v963_v62, 2  ;;  %v1174_v62 = vld [vmem:[%s4707_s5 + $0x70] sm:$0xff] }
  0x67   : > { %2605 = vmatmul.msk.f32.gmra.mxu0 %vm658_vm1, %v860_v39 }
  0x6f   : > { %2606 = vmatmul.msk.f32.gmra.mxu0 %vm658_vm1, %v859_v38 }
  0xac   : > { %v692_v40 = vpop.f32.mrf.mxu0 }
  0xad   : > { %v718_v44 = vpop.f32.mrf.mxu1 }
  0xaf   : > { %v785_v41 = vpop.f32.mrf.mxu3 }
  0xb0   : > { %v786_v6 = vadd.f32 %v785_v41, %v692_v40  ;;  %v3171_v41 = vld [vmem:[%s4705_s24] sm:$0xff] }
  0xb2   : > { %v3142_v42 = vpop.f32.mrf.mxu2 }
  0xb4   : > { %v695_v43 = vpop.f32.mrf.mxu0 }
  0xb5   : > { %v721_v49 = vpop.f32.mrf.mxu1 }
  0xb7   : > { %v788_v45 = vpop.f32.mrf.mxu3 }
  0xb8   : > { %v789_v1 = vadd.f32 %v788_v45, %v695_v43  ;;  %v1188_v45 = vld [vmem:[%s4707_s5 + $0xe0] sm:$0xff] }
  0xba   : > { %v3144_v46 = vpop.f32.mrf.mxu2 }
  0xbc   : > { %v698_v47 = vpop.f32.mrf.mxu0 }
  0xbd   : > { %v724_v54 = vpop.f32.mrf.mxu1 }
  0xbf   : > { %v791_v48 = vpop.f32.mrf.mxu3 }
  0xc0   : > { %v792_v7 = vadd.f32 %v791_v48, %v698_v47  ;;  %v1186_v47 = vld [vmem:[%s4707_s5 + $0xd0] sm:$0xff] }
  0xc1   : > { %v1222_v48 = vld [vmem:[%s4707_s5 + $0x1f0] sm:$0xff] }
  0xc2   : > { %v3146_v50 = vpop.f32.mrf.mxu2 }
  0xc4   : > { %v811_v51 = vpop.f32.mrf.mxu0 }
  0xc5   : > { %v812_v59 = vadd.f32 %v811_v51, %v718_v44  ;;  %v837_v61 = vpop.f32.mrf.mxu1  ;;  %v1184_v51 = vld [vmem:[%s4707_s5 + $0xc0] sm:$0xff] }
  0xc6   : > { %v838_v32 = vadd.f32 %v837_v61, %v3142_v42  ;;  %v1190_v42 = vld [vmem:[%s4707_s5 + $0xf0] sm:$0xff]  ;;  %v1189_v61 = vld [vmem:[%s4707_s5 + $0xe8] sm:$0xff] }
  0xc7   : > { %v919_v52 = vpop.f32.mrf.mxu3  ;;  %1247 = vmatpush.msrb.mxu0 %v1190_v42  ;;  %v1203_v42 = vld [vmem:[%s4707_s5 + $0x158] sm:$0xff] }
  0xc8   : > { %v955_v3 = vadd.f32 %v919_v52, %v812_v59  ;;  %v1218_v52 = vld [vmem:[%s4707_s5 + $0x1d0] sm:$0xff]  ;;  %v1176_v59 = vld [vmem:[%s4707_s5 + $0x80] sm:$0xff] }
  0xc9   : > { %1248 = vmatpush.msrb.mxu0 %v1188_v45  ;;  %v1201_v45 = vld [vmem:[%s4707_s5 + $0x148] sm:$0xff] }
  0xca   : > { %v893_v53 = vpop.f32.mrf.mxu2  ;;  %v972_v15 = vadd.f32 %v966_v4, %v955_v3  ;;  %v1185_v3 = vld [vmem:[%s4707_s5 + $0xc8] sm:$0xff] }
  0xcb   : > { %v954_v12 = vadd.f32 %v893_v53, %v786_v6  ;;  %1249 = vmatpush.msrb.mxu0 %v1186_v47  ;;  %v1182_v53 = vld [vmem:[%s4707_s5 + $0xb0] sm:$0xff]  ;;  %v1183_v6 = vld [vmem:[%s4707_s5 + $0xb8] sm:$0xff] }
  0xcc   : > { %v814_v55 = vpop.f32.mrf.mxu0  ;;  %v981_v24 = vmax.f32 %v972_v15, 0.0  ;;  %v1177_v15 = vld [vmem:[%s4707_s5 + $0x88] sm:$0xff]  ;;  %v1463_v47 = vld [vmem:[%s4708_s6 + $0x270] sm:$0xff] }
  0xcd   : > { %v815_v57 = vadd.f32 %v814_v55, %v721_v49  ;;  %v840_v21 = vpop.f32.mrf.mxu1  ;;  %v971_v22 = vadd.f32 %v965_v13, %v954_v12  ;;  %v1220_v49 = vld [vmem:[%s4707_s5 + $0x1e0] sm:$0xff]  ;;  %1250 = vmatpush.msrb.mxu0 %v1184_v51  ;;  %v1179_v12 = vld [vmem:[%s4707_s5 + $0x98] sm:$0xff] }
  0xce   : > { %v841_v31 = vadd.f32 %v840_v21, %v3144_v46  ;;  %v1180_v55 = vld [vmem:[%s4707_s5 + $0xa0] sm:$0xff]  ;;  %v1198_v21 = vld [vmem:[%s4707_s5 + $0x130] sm:$0xff] }
  0xcf   : > { %v922_v56 = vpop.f32.mrf.mxu3  ;;  %v980_v27 = vmax.f32 %v971_v22, 0.0  ;;  %1251 = vmatpush.msrb.mxu0 %v1182_v53  ;;  %v1173_v22 = vld [vmem:[%s4707_s5 + $0x68] sm:$0xff]  ;;  %v1461_v51 = vld [vmem:[%s4708_s6 + $0x260] sm:$0xff] }
  0xd0   : > { %v958_v0 = vadd.f32 %v922_v56, %v815_v57  ;;  %v1216_v56 = vld [vmem:[%s4707_s5 + $0x1c0] sm:$0xff]  ;;  %v1178_v57 = vld [vmem:[%s4707_s5 + $0x90] sm:$0xff]  ;;  %v1197_v53 = vld [vmem:[%s4707_s5 + $0x128] sm:$0xff] }
  0xd1   : > { %1252 = vmatpush.msrb.mxu0 %v1180_v55  ;;  %v1459_v55 = vld [vmem:[%s4708_s6 + $0x250] sm:$0xff] }
  0xd2   : > { %v896_v58 = vpop.f32.mrf.mxu2  ;;  %v975_v9 = vadd.f32 %v966_v4, %v958_v0  ;;  %v1187_v0 = vld [vmem:[%s4707_s5 + $0xd8] sm:$0xff] }
  0xd3   : > { %v957_v8 = vadd.f32 %v896_v58, %v789_v1  ;;  %v1191_v58 = vld [vmem:[%s4707_s5 + $0xf8] sm:$0xff]  ;;  %1253 = vmatpush.msrb.mxu0 %v1178_v57  ;;  %v1172_v1 = vld [vmem:[%s4707_s5 + $0x60] sm:$0xff]  ;;  %v1234_v57 = vld [vmem:[%s4707_s5 + $0x250] sm:$0xff] }
  0xd4   : > { %v817_v60 = vpop.f32.mrf.mxu0  ;;  %v984_v20 = vmax.f32 %v975_v9, 0.0  ;;  %v1181_v9 = vld [vmem:[%s4707_s5 + $0xa8] sm:$0xff] }
  0xd5   : > { %v818_v63 = vadd.f32 %v817_v60, %v724_v54  ;;  %v974_v18 = vadd.f32 %v965_v13, %v957_v8  ;;  %v843_v29 = vpop.f32.mrf.mxu1  ;;  %v3206_v54 = vld [vmem:[%s4706_s30 + $0x8] sm:$0x3]  ;;  %v1214_v60 = vld [vmem:[%s4707_s5 + $0x1b0] sm:$0xff]  ;;  %1254 = vmatpush.msrb.mxu0 %v1176_v59  ;;  %v1457_v59 = vld [vmem:[%s4708_s6 + $0x240] sm:$0xff] }
  0xd6   : > { %v844_v34 = vadd.f32 %v843_v29, %v3146_v50  ;;  %v1206_v8 = vld [vmem:[%s4707_s5 + $0x170] sm:$0xff]  ;;  %v1171_v29 = vld [vmem:[%s4707_s5 + $0x58] sm:$0xff] }
  0xd7   : > { %v925_v2 = vpop.f32.mrf.mxu3  ;;  %v983_v26 = vmax.f32 %v974_v18, 0.0  ;;  %1255 = vmatpush.msrb.mxu0 %v1174_v62  ;;  %v1175_v18 = vld [vmem:[%s4707_s5 + $0x78] sm:$0xff]  ;;  %v1401_v62 = vld [vmem:[%s4708_s6 + $0x80] sm:$0xff] }
  0xd8   : > { %v961_v5 = vadd.f32 %v925_v2, %v818_v63  ;;  %v1212_v63 = vld [vmem:[%s4707_s5 + $0x1a0] sm:$0xff]  ;;  %v1210_v2 = vld [vmem:[%s4707_s5 + $0x190] sm:$0xff] }
  0xd9   : > { %1256 = vmatpush.msrb.mxu0 %v1172_v1  ;;  %v1399_v1 = vld [vmem:[%s4708_s6 + $0x70] sm:$0xff] }
  0xda   : > { %v978_v10 = vadd.f32 %v966_v4, %v961_v5  ;;  %v899_v11 = vpop.f32.mrf.mxu2  ;;  %v1170_v4 = vld [vmem:[%s4707_s5 + $0x50] sm:$0xff]  ;;  %v1208_v5 = vld [vmem:[%s4707_s5 + $0x180] sm:$0xff] }
  0xdb   : > { %v960_v14 = vadd.f32 %v899_v11, %v792_v7  ;;  %v1168_v7 = vld [vmem:[%s4707_s5 + $0x40] sm:$0xff]  ;;  %1257 = vmatpush.msrb.mxu0 %v1170_v4 }
  0xdc   : > { %v987_v16 = vmax.f32 %v978_v10, 0.0  ;;  %v945_v17 = vpop.f32.mrf.mxu0  ;;  %v1166_v10 = vld [vmem:[%s4707_s5 + $0x30] sm:$0xff]  ;;  %v1204_v11 = vld [vmem:[%s4707_s5 + $0x160] sm:$0xff] }
  0xdd   : > { %v977_v19 = vadd.f32 %v965_v13, %v960_v14  ;;  %v956_v36 = vadd.f32 %v945_v17, %v838_v32  ;;  %1258 = vmatpush.msrb.mxu0 %v1168_v7  ;;  %v1164_v13 = vld [vmem:[%s4707_s5 + $0x20] sm:$0xff]  ;;  %v1202_v14 = vld [vmem:[%s4707_s5 + $0x150] sm:$0xff]  ;;  %v1169_v32 = vld [vmem:[%s4707_s5 + $0x48] sm:$0xff] }
  0xde   : > { %2610 = vmatpush.msk.msra.mxu2 %vm998_vm3, %v987_v16  ;;  %v1200_v17 = vld [vmem:[%s4707_s5 + $0x140] sm:$0xff]  ;;  %v1395_v7 = vld [vmem:[%s4708_s6 + $0x50] sm:$0xff] }
  0xdf   : > { %v986_v23 = vmax.f32 %v977_v19, 0.0  ;;  %v973_v43 = vadd.f32 %v967_v37, %v956_v36  ;;  %1259 = vmatpush.msrb.mxu0 %v1166_v10  ;;  %v1160_v19 = vld [vmem:[%s4707_s5] sm:$0xff]  ;;  %v1207_v36 = vld [vmem:[%s4707_s5 + $0x178] sm:$0xff] }
  0xe0   : > { %1045 = vmatpush.msra.mxu2 %v984_v20  ;;  %v1397_v4 = vld [vmem:[%s4708_s6 + $0x60] sm:$0xff]  ;;  %v1239_v10 = vld [vmem:[%s4707_s5 + $0x278] sm:$0xff] }
  0xe1   : > { %2607 = vmatpush.msk.msra.mxu1 %vm998_vm3, %v986_v23  ;;  %v982_v50 = vmax.f32 %v973_v43, 0.0  ;;  %1260 = vmatpush.msrb.mxu0 %v1164_v13  ;;  %v1411_v43 = vld [vmem:[%s4708_s6 + $0xd0] sm:$0xff] }
  0xe2   : > { %1046 = vmatpush.msra.mxu2 %v981_v24  ;;  %v1391_v13 = vld [vmem:[%s4708_s6 + $0x30] sm:$0xff] }
  0xe3   : > { %1022 = vmatpush.msra.mxu1 %v983_v26  ;;  %2611 = vmatmul.msk.f32.vlgmr.msra.gmra.mxu2 %vm991_vm4, %v989_v25 }
  0xe4   : > { %2619 = vmatpush.msk.msrb.mxu2 %vm998_vm3, %v987_v16  ;;  %v948_v28 = vpop.f32.mrf.mxu0  ;;  %v1162_v16 = vld [vmem:[%s4707_s5 + $0x10] sm:$0xff] }
  0xe5   : > { %1023 = vmatpush.msra.mxu1 %v980_v27  ;;  %v959_v33 = vadd.f32 %v948_v28, %v841_v31  ;;  %1261 = vmatpush.msrb.mxu0 %v1162_v16  ;;  %v1196_v28 = vld [vmem:[%s4707_s5 + $0x120] sm:$0xff]  ;;  %v1194_v31 = vld [vmem:[%s4707_s5 + $0x110] sm:$0xff] }
  0xe6   : > { %1122 = vmatpush.msrb.mxu2 %v984_v20  ;;  %2608 = vmatmul.msk.f32.vlgmr.msra.gmra.mxu1 %vm991_vm4, %v989_v25  ;;  %v1223_v20 = vld [vmem:[%s4707_s5 + $0x1f8] sm:$0xff] }
  0xe7   : > { %2616 = vmatpush.msk.msrb.mxu1 %vm998_vm3, %v986_v23  ;;  %v976_v39 = vadd.f32 %v967_v37, %v959_v33  ;;  %1262 = vmatpush.msrb.mxu0 %v1160_v19  ;;  %v1221_v23 = vld [vmem:[%s4707_s5 + $0x1e8] sm:$0xff] }
  0xe8   : > { %1123 = vmatpush.msrb.mxu2 %v981_v24  ;;  %v1219_v24 = vld [vmem:[%s4707_s5 + $0x1d8] sm:$0xff]  ;;  %v1209_v33 = vld [vmem:[%s4707_s5 + $0x188] sm:$0xff] }
  0xe9   : > { %1099 = vmatpush.msrb.mxu1 %v983_v26  ;;  %v985_v46 = vmax.f32 %v976_v39, 0.0  ;;  %1339 = vmatpush.msra.mxu0 %v1223_v20  ;;  %v1215_v26 = vld [vmem:[%s4707_s5 + $0x1b8] sm:$0xff]  ;;  %v1205_v39 = vld [vmem:[%s4707_s5 + $0x168] sm:$0xff] }
  0xea   : > { %v1231_v20 = vld [vmem:[%s4707_s5 + $0x238] sm:$0xff] }
  0xeb   : > { %1100 = vmatpush.msrb.mxu1 %v980_v27  ;;  %2612 = vmatmul.msk.f32.gmra.mxu2 %vm991_vm4, %v990_v30  ;;  %v1213_v27 = vld [vmem:[%s4707_s5 + $0x1a8] sm:$0xff] }
  0xec   : > { %v951_v35 = vpop.f32.mrf.mxu0  ;;  %1340 = vmatpush.msra.mxu0 %v1221_v23 }
  0xed   : > { %v962_v38 = vadd.f32 %v951_v35, %v844_v34  ;;  %1270 = vmatpush.msra.mxu1 %v1222_v48  ;;  %v1192_v34 = vld [vmem:[%s4707_s5 + $0x100] sm:$0xff]  ;;  %v1167_v35 = vld [vmem:[%s4707_s5 + $0x38] sm:$0xff]  ;;  %v1238_v48 = vld [vmem:[%s4707_s5 + $0x270] sm:$0xff] }
  0xee   : > { %2609 = vmatmul.msk.f32.gmra.mxu1 %vm991_vm4, %v990_v30  ;;  %1341 = vmatpush.msra.mxu0 %v1219_v24  ;;  %v1227_v24 = vld [vmem:[%s4707_s5 + $0x218] sm:$0xff] }
  0xef   : > { %v979_v40 = vadd.f32 %v967_v37, %v962_v38  ;;  %1271 = vmatpush.msra.mxu1 %v1220_v49  ;;  %v1415_v37 = vld [vmem:[%s4708_s6 + $0xf0] sm:$0xff]  ;;  %v1165_v38 = vld [vmem:[%s4707_s5 + $0x28] sm:$0xff]  ;;  %v1199_v49 = vld [vmem:[%s4707_s5 + $0x138] sm:$0xff]  ;;  %1301 = vmatpush.msra.mxu2 %v1238_v48 }
  0xf0   : > { %v1406_v48 = vld [vmem:[%s4708_s6 + $0xa8] sm:$0xff] }
  0xf1   : > { %v988_v44 = vmax.f32 %v979_v40, 0.0  ;;  %1272 = vmatpush.msra.mxu1 %v1218_v52  ;;  %v1413_v40 = vld [vmem:[%s4708_s6 + $0xe0] sm:$0xff] }
  0xf2   : > { %v1236_v52 = vld [vmem:[%s4707_s5 + $0x260] sm:$0xff] }
  0xf3   : > { %2613 = vmatpush.msk.msra.mxu3 %vm998_vm3, %v988_v44  ;;  %2620 = vmatmul.msk.f32.vlgmr.msrb.gmra.mxu2 %vm991_vm4, %v3171_v41 }
  0xf4   : > { %1273 = vmatpush.msra.mxu1 %v1216_v56  ;;  %1302 = vmatpush.msra.mxu2 %v1236_v52  ;;  %v1195_v56 = vld [vmem:[%s4707_s5 + $0x118] sm:$0xff] }
  0xf5   : > { %1068 = vmatpush.msra.mxu3 %v985_v46  ;;  %v1436_v52 = vld [vmem:[%s4708_s6 + $0x198] sm:$0xff] }
  0xf6   : > { %2617 = vmatmul.msk.f32.vlgmr.msrb.gmra.mxu1 %vm991_vm4, %v3171_v41  ;;  %1303 = vmatpush.msra.mxu2 %v1234_v57  ;;  %v1456_v57 = vld [vmem:[%s4708_s6 + $0x238] sm:$0xff] }
  0xf7   : > { %1069 = vmatpush.msra.mxu3 %v982_v50  ;;  %1274 = vmatpush.msra.mxu1 %v1214_v60  ;;  %v1193_v60 = vld [vmem:[%s4707_s5 + $0x108] sm:$0xff] }
  0xf8   : > { %2614 = vmatmul.msk.f32.vlgmr.msra.gmra.mxu3 %vm991_vm4, %v989_v25  ;;  %v1217_v25 = vld [vmem:[%s4707_s5 + $0x1c8] sm:$0xff] }
  0xf9   : > { %2622 = vmatpush.msk.msrb.mxu3 %vm998_vm3, %v988_v44  ;;  %1275 = vmatpush.msra.mxu1 %v1212_v63  ;;  %v1161_v44 = vld [vmem:[%s4707_s5 + $0x8] sm:$0xff]  ;;  %v1455_v63 = vld [vmem:[%s4708_s6 + $0x230] sm:$0xff] }
  0xfa   : > { %1342 = vmatpush.msra.mxu0 %v1217_v25 }
  0xfb   : > { %1145 = vmatpush.msrb.mxu3 %v985_v46  ;;  %2621 = vmatmul.msk.f32.gmra.mxu2 %vm991_vm4, %v3206_v54  ;;  %v1409_v46 = vld [vmem:[%s4708_s6 + $0xc0] sm:$0xff] }
  0xfc   : > { %1276 = vmatpush.msra.mxu1 %v1210_v2  ;;  %1343 = vmatpush.msra.mxu0 %v1215_v26  ;;  %v1453_v2 = vld [vmem:[%s4708_s6 + $0x220] sm:$0xff]  ;;  %v1225_v26 = vld [vmem:[%s4707_s5 + $0x208] sm:$0xff] }
  0xfd   : > { %1146 = vmatpush.msrb.mxu3 %v982_v50  ;;  %v1407_v50 = vld [vmem:[%s4708_s6 + $0xb0] sm:$0xff] }
  0xfe   : > { %2618 = vmatmul.msk.f32.gmra.mxu1 %vm991_vm4, %v3206_v54  ;;  %1344 = vmatpush.msra.mxu0 %v1213_v27 }
  0xff   : > { %1316 = vmatpush.msra.mxu3 %v1191_v58  ;;  %1277 = vmatpush.msra.mxu1 %v1208_v5  ;;  %v1403_v58 = vld [vmem:[%s4708_s6 + $0x90] sm:$0xff] }
 0x100   : > { %2615 = vmatmul.msk.f32.gmra.mxu3 %vm991_vm4, %v990_v30  ;;  %v1211_v30 = vld [vmem:[%s4707_s5 + $0x198] sm:$0xff]  ;;  %v1451_v5 = vld [vmem:[%s4708_s6 + $0x210] sm:$0xff] }
 0x101   : > { %1317 = vmatpush.msra.mxu3 %v1189_v61  ;;  %1278 = vmatpush.msra.mxu1 %v1206_v8  ;;  %v1232_v61 = vld [vmem:[%s4707_s5 + $0x240] sm:$0xff] }
 0x102   : > { %1345 = vmatpush.msra.mxu0 %v1211_v30  ;;  %1304 = vmatpush.msra.mxu2 %v1232_v61  ;;  %v1449_v8 = vld [vmem:[%s4708_s6 + $0x200] sm:$0xff]  ;;  %v1448_v30 = vld [vmem:[%s4708_s6 + $0x1f8] sm:$0xff]  ;;  %v1430_v61 = vld [vmem:[%s4708_s6 + $0x168] sm:$0xff] }
 0x103   : > { %1318 = vmatpush.msra.mxu3 %v1187_v0  ;;  %1279 = vmatpush.msra.mxu1 %v1204_v11  ;;  %v1230_v0 = vld [vmem:[%s4707_s5 + $0x230] sm:$0xff]  ;;  %v1393_v11 = vld [vmem:[%s4708_s6 + $0x40] sm:$0xff] }
 0x104   : > { %1346 = vmatpush.msra.mxu0 %v1209_v33  ;;  %1305 = vmatpush.msra.mxu2 %v1230_v0  ;;  %v1414_v33 = vld [vmem:[%s4708_s6 + $0xe8] sm:$0xff]  ;;  %v1428_v0 = vld [vmem:[%s4708_s6 + $0x158] sm:$0xff] }
 0x105   : > { %1319 = vmatpush.msra.mxu3 %v1185_v3  ;;  %1280 = vmatpush.msra.mxu1 %v1202_v14  ;;  %v1228_v3 = vld [vmem:[%s4707_s5 + $0x220] sm:$0xff]  ;;  %v1235_v14 = vld [vmem:[%s4707_s5 + $0x258] sm:$0xff] }
 0x106   : > { %1347 = vmatpush.msra.mxu0 %v1207_v36  ;;  %1306 = vmatpush.msra.mxu2 %v1228_v3  ;;  %v1412_v36 = vld [vmem:[%s4708_s6 + $0xd8] sm:$0xff] }
 0x107   : > { %1320 = vmatpush.msra.mxu3 %v1183_v6  ;;  %1281 = vmatpush.msra.mxu1 %v1200_v17  ;;  %v1226_v6 = vld [vmem:[%s4707_s5 + $0x210] sm:$0xff]  ;;  %v1233_v17 = vld [vmem:[%s4707_s5 + $0x248] sm:$0xff] }
 0x108   : > { %2623 = vmatmul.msk.f32.vlgmr.msrb.gmra.mxu3 %vm991_vm4, %v3171_v41  ;;  %1348 = vmatpush.msra.mxu0 %v1205_v39  ;;  %v1163_v41 = vld [vmem:[%s4707_s5 + $0x18] sm:$0xff] }
 0x109   : > { %1321 = vmatpush.msra.mxu3 %v1181_v9  ;;  %1282 = vmatpush.msra.mxu1 %v1198_v21  ;;  %v1224_v9 = vld [vmem:[%s4707_s5 + $0x200] sm:$0xff] }
 0x10a   : > { %1349 = vmatpush.msra.mxu0 %v1203_v42  ;;  %1307 = vmatpush.msra.mxu2 %v1226_v6  ;;  %v1385_v21 = vld [vmem:[%s4708_s6] sm:$0xff]  ;;  %v1426_v6 = vld [vmem:[%s4708_s6 + $0x148] sm:$0xff] }
 0x10b   : > { %1322 = vmatpush.msra.mxu3 %v1179_v12  ;;  %1283 = vmatpush.msra.mxu1 %v1196_v28  ;;  %v1237_v12 = vld [vmem:[%s4707_s5 + $0x268] sm:$0xff] }
 0x10c   : > { %1350 = vmatpush.msra.mxu0 %v1201_v45  ;;  %1308 = vmatpush.msra.mxu2 %v1224_v9  ;;  %v1440_v45 = vld [vmem:[%s4708_s6 + $0x1b8] sm:$0xff] }
 0x10d   : > { %1323 = vmatpush.msra.mxu3 %v1177_v15  ;;  %1284 = vmatpush.msra.mxu1 %v1194_v31  ;;  %v1389_v15 = vld [vmem:[%s4708_s6 + $0x20] sm:$0xff]  ;;  %v1424_v9 = vld [vmem:[%s4708_s6 + $0x138] sm:$0xff] }
 0x10e   : > { %1351 = vmatpush.msra.mxu0 %v1199_v49  ;;  %1370 = vmatpush.msrb.mxu2 %v1239_v10  ;;  %v1438_v49 = vld [vmem:[%s4708_s6 + $0x1a8] sm:$0xff]  ;;  %v1443_v10 = vld [vmem:[%s4708_s6 + $0x1d0] sm:$0xff] }
 0x10f   : > { %1324 = vmatpush.msra.mxu3 %v1175_v18  ;;  %1285 = vmatpush.msra.mxu1 %v1192_v34  ;;  %v1387_v18 = vld [vmem:[%s4708_s6 + $0x10] sm:$0xff]  ;;  %v1446_v34 = vld [vmem:[%s4708_s6 + $0x1e8] sm:$0xff] }
 0x110   : > { %2624 = vmatmul.msk.f32.gmra.mxu3 %vm991_vm4, %v3206_v54  ;;  %v1405_v54 = vld [vmem:[%s4708_s6 + $0xa0] sm:$0xff]  ;;  %1352 = vmatpush.msra.mxu0 %v1197_v53  ;;  %v1458_v53 = vld [vmem:[%s4708_s6 + $0x248] sm:$0xff] }
 0x111   : > { %1325 = vmatpush.msra.mxu3 %v1173_v22  ;;  %1465 = vmatpush.msrb.mxu1 %v1415_v37  ;;  %v1229_v22 = vld [vmem:[%s4707_s5 + $0x228] sm:$0xff]  ;;  %v1444_v37 = vld [vmem:[%s4708_s6 + $0x1d8] sm:$0xff]  ;;  %s2493_s5 = sshll.u32 %s2489_s1, 4  ;;  %s2494_s5 = int_to_ptr.hbm [resolvable:$true] %s2493_s5 }
 0x112   : > { %1353 = vmatpush.msra.mxu0 %v1195_v56  ;;  %1371 = vmatpush.msrb.mxu2 %v1237_v12  ;;  %v1434_v56 = vld [vmem:[%s4708_s6 + $0x188] sm:$0xff]  ;;  %s2813_s24 = sshra.s32 %s2494_s5, 4  ;;  %s2814_s24 = int_to_ptr.hbm [resolvable:$true] %s2813_s24 }
 0x113   : > { %1326 = vmatpush.msra.mxu3 %v1171_v29  ;;  %1466 = vmatpush.msrb.mxu1 %v1413_v40  ;;  %v1416_v29 = vld [vmem:[%s4708_s6 + $0xf8] sm:$0xff]  ;;  %v1410_v40 = vld [vmem:[%s4708_s6 + $0xc8] sm:$0xff]  ;;  %p2820_p0 = scmp.lt.s32.totalorder %s2814_s24, %s4673_s20 }
 0x114   : > { %1354 = vmatpush.msra.mxu0 %v1193_v60  ;;  %1372 = vmatpush.msrb.mxu2 %v1235_v14  ;;  %v1398_v60 = vld [vmem:[%s4708_s6 + $0x68] sm:$0xff]  ;;  %v1441_v14 = vld [vmem:[%s4708_s6 + $0x1c0] sm:$0xff] }
 0x115   : > { %1327 = vmatpush.msra.mxu3 %v1169_v32  ;;  %1467 = vmatpush.msrb.mxu1 %v1411_v43  ;;  %v1390_v12 = vld [vmem:[%s4708_s6 + $0x28] sm:$0xff] }
 0x116   : > { %1373 = vmatpush.msrb.mxu2 %v1233_v17 }
 0x117   : > { %1328 = vmatpush.msra.mxu3 %v1167_v35  ;;  %1468 = vmatpush.msrb.mxu1 %v1409_v46  ;;  %v1464_v35 = vld [vmem:[%s4708_s6 + $0x278] sm:$0xff] }
 0x118   : > { %1374 = vmatpush.msrb.mxu2 %v1231_v20  ;;  %v1420_v20 = vld [vmem:[%s4708_s6 + $0x118] sm:$0xff] }
 0x119   : > { %1329 = vmatpush.msra.mxu3 %v1165_v38  ;;  %1469 = vmatpush.msrb.mxu1 %v1407_v50  ;;  %v1462_v38 = vld [vmem:[%s4708_s6 + $0x268] sm:$0xff]  ;;  %v1460_v50 = vld [vmem:[%s4708_s6 + $0x258] sm:$0xff] }
 0x11a   : > { %1375 = vmatpush.msrb.mxu2 %v1229_v22  ;;  %v1418_v22 = vld [vmem:[%s4708_s6 + $0x108] sm:$0xff] }
 0x11b   : > { %1330 = vmatpush.msra.mxu3 %v1163_v41  ;;  %1470 = vmatpush.msrb.mxu1 %v1405_v54  ;;  %v1442_v41 = vld [vmem:[%s4708_s6 + $0x1c8] sm:$0xff] }
 0x11c   : > { %1376 = vmatpush.msrb.mxu2 %v1227_v24  ;;  %v1433_v24 = vld [vmem:[%s4708_s6 + $0x180] sm:$0xff] }
 0x11d   : > { %1331 = vmatpush.msra.mxu3 %v1161_v44  ;;  %1471 = vmatpush.msrb.mxu1 %v1403_v58  ;;  %v1408_v44 = vld [vmem:[%s4708_s6 + $0xb8] sm:$0xff] }
 0x11e   : > { %1377 = vmatpush.msrb.mxu2 %v1225_v26  ;;  %v1400_v58 = vld [vmem:[%s4708_s6 + $0x78] sm:$0xff]  ;;  %v1429_v26 = vld [vmem:[%s4708_s6 + $0x160] sm:$0xff] }
 0x11f   : > { %1519 = vmatpush.msrb.mxu3 %v1463_v47  ;;  %1472 = vmatpush.msrb.mxu1 %v1401_v62  ;;  %v1454_v62 = vld [vmem:[%s4708_s6 + $0x228] sm:$0xff] }
 0x121   : > { %1520 = vmatpush.msrb.mxu3 %v1461_v51  ;;  %1473 = vmatpush.msrb.mxu1 %v1399_v1  ;;  %v1404_v51 = vld [vmem:[%s4708_s6 + $0x98] sm:$0xff] }
 0x122   : > { %v1452_v1 = vld [vmem:[%s4708_s6 + $0x218] sm:$0xff] }
 0x123   : > { %1521 = vmatpush.msrb.mxu3 %v1459_v55  ;;  %1474 = vmatpush.msrb.mxu1 %v1397_v4  ;;  %v1402_v55 = vld [vmem:[%s4708_s6 + $0x88] sm:$0xff]  ;;  %v1447_v4 = vld [vmem:[%s4708_s6 + $0x1f0] sm:$0xff] }
 0x125   : > { %1522 = vmatpush.msrb.mxu3 %v1457_v59  ;;  %1475 = vmatpush.msrb.mxu1 %v1395_v7  ;;  %v1432_v59 = vld [vmem:[%s4708_s6 + $0x178] sm:$0xff]  ;;  %v1445_v7 = vld [vmem:[%s4708_s6 + $0x1e0] sm:$0xff] }
 0x127   : > { %1523 = vmatpush.msrb.mxu3 %v1455_v63  ;;  %1476 = vmatpush.msrb.mxu1 %v1393_v11  ;;  %v1396_v63 = vld [vmem:[%s4708_s6 + $0x58] sm:$0xff]  ;;  %v1450_v11 = vld [vmem:[%s4708_s6 + $0x208] sm:$0xff] }
 0x129   : > { %1524 = vmatpush.msrb.mxu3 %v1453_v2  ;;  %1477 = vmatpush.msrb.mxu1 %v1391_v13  ;;  %v1422_v13 = vld [vmem:[%s4708_s6 + $0x128] sm:$0xff] }
 0x12b   : > { %1525 = vmatpush.msrb.mxu3 %v1451_v5  ;;  %1478 = vmatpush.msrb.mxu1 %v1389_v15  ;;  %v1394_v5 = vld [vmem:[%s4708_s6 + $0x48] sm:$0xff] }
 0x12d   : > { %1526 = vmatpush.msrb.mxu3 %v1449_v8  ;;  %1479 = vmatpush.msrb.mxu1 %v1387_v18  ;;  %v1392_v8 = vld [vmem:[%s4708_s6 + $0x38] sm:$0xff]  ;;  %v1439_v18 = vld [vmem:[%s4708_s6 + $0x1b0] sm:$0xff] }
 0x12f   : > { %1480 = vmatpush.msrb.mxu1 %v1385_v21  ;;  %v1437_v21 = vld [vmem:[%s4708_s6 + $0x1a0] sm:$0xff] }
 0x163   : > { %v1025_v16 = vpop.f32.mrf.mxu1 }
 0x166   : > { %v1048_v19 = vpop.f32.mrf.mxu2 }
 0x16b   : > { %v1028_v23 = vpop.f32.mrf.mxu1 }
 0x16e   : > { %v1051_v25 = vpop.f32.mrf.mxu2 }
 0x173   : > { %v1102_v27 = vpop.f32.mrf.mxu1 }
 0x174   : > { %v3506_v28 = vmax.f32 %v1025_v16, %v1102_v27  ;;  %v1388_v16 = vld [vmem:[%s4708_s6 + $0x18] sm:$0xff]  ;;  %v1427_v27 = vld [vmem:[%s4708_s6 + $0x150] sm:$0xff] }
 0x176   : > { %v1125_v31 = vpop.f32.mrf.mxu2  ;;  %1263 = vmatmul.f32.vlgmr.msrb.gmra.mxu0 %v3506_v28  ;;  %1332 = vmatmul.f32.vlgmr.msra.gmra.mxu3 %v3506_v28 }
 0x177   : > { %v3514_v32 = vmax.f32 %v1048_v19, %v1125_v31  ;;  %1534 = vmatpush.msrb.mxu0 %v1416_v29  ;;  %1557 = vmatpush.msra.mxu3 %v1448_v30  ;;  %v1386_v19 = vld [vmem:[%s4708_s6 + $0x8] sm:$0xff]  ;;  %v1423_v29 = vld [vmem:[%s4708_s6 + $0x130] sm:$0xff]  ;;  %v1421_v30 = vld [vmem:[%s4708_s6 + $0x120] sm:$0xff] }
 0x178   : > { %v1419_v31 = vld [vmem:[%s4708_s6 + $0x110] sm:$0xff] }
 0x179   : > { %1286 = vmatmul.f32.vlgmr.msra.gmra.mxu1 %v3514_v32  ;;  %1535 = vmatpush.msrb.mxu0 %v1414_v33  ;;  %v1417_v33 = vld [vmem:[%s4708_s6 + $0x100] sm:$0xff] }
 0x17a   : > { %1558 = vmatpush.msra.mxu3 %v1446_v34  ;;  %1588 = vmatpush.msra.mxu1 %v1464_v35  ;;  %v2664_v34 = vld [vmem:[%s4709_s7 + $0x238] sm:$0xff]  ;;  %v2662_v35 = vld [vmem:[%s4709_s7 + $0x228] sm:$0xff] }
 0x17b   : > { %v1071_v39 = vpop.f32.mrf.mxu3  ;;  %v1105_v42 = vpop.f32.mrf.mxu1  ;;  %1536 = vmatpush.msrb.mxu0 %v1412_v36  ;;  %v2660_v36 = vld [vmem:[%s4709_s7 + $0x218] sm:$0xff] }
 0x17c   : > { %1559 = vmatpush.msra.mxu3 %v1444_v37  ;;  %v3543_v43 = vmax.f32 %v1028_v23, %v1105_v42  ;;  %1589 = vmatpush.msra.mxu1 %v1462_v38  ;;  %v1435_v23 = vld [vmem:[%s4708_s6 + $0x190] sm:$0xff]  ;;  %v2656_v37 = vld [vmem:[%s4709_s7 + $0x1f8] sm:$0xff]  ;;  %v2654_v38 = vld [vmem:[%s4709_s7 + $0x1e8] sm:$0xff] }
 0x17d   : > { %1537 = vmatpush.msrb.mxu0 %v1410_v40  ;;  %v1638_v42 = vld [vmem:[%s4709_s7 + $0xf8] sm:$0xff] }
 0x17e   : > { %v1128_v46 = vpop.f32.mrf.mxu2  ;;  %1560 = vmatpush.msra.mxu3 %v1442_v41  ;;  %1266 = vmatmul.f32.gmra.mxu0 %v3543_v43  ;;  %v2652_v41 = vld [vmem:[%s4709_s7 + $0x1d8] sm:$0xff] }
 0x17f   : > { %v3551_v47 = vmax.f32 %v1051_v25, %v1128_v46  ;;  %1335 = vmatmul.f32.gmra.mxu3 %v3543_v43  ;;  %1538 = vmatpush.msrb.mxu0 %v1408_v44  ;;  %v1431_v25 = vld [vmem:[%s4708_s6 + $0x170] sm:$0xff]  ;;  %v1636_v44 = vld [vmem:[%s4709_s7 + $0xe8] sm:$0xff]  ;;  %v2648_v46 = vld [vmem:[%s4709_s7 + $0x1b8] sm:$0xff] }
 0x180   : > { %1561 = vmatpush.msra.mxu3 %v1440_v45  ;;  %1590 = vmatpush.msra.mxu1 %v1460_v50  ;;  %v1632_v50 = vld [vmem:[%s4709_s7 + $0xc8] sm:$0xff] }
 0x181   : > { %1289 = vmatmul.f32.gmra.mxu1 %v3551_v47  ;;  %1539 = vmatpush.msrb.mxu0 %v1406_v48  ;;  %v2663_v48 = vld [vmem:[%s4709_s7 + $0x230] sm:$0xff] }
 0x182   : > { %1562 = vmatpush.msra.mxu3 %v1438_v49  ;;  %1591 = vmatpush.msra.mxu1 %v1458_v53  ;;  %v2646_v49 = vld [vmem:[%s4709_s7 + $0x1a8] sm:$0xff]  ;;  %v2644_v53 = vld [vmem:[%s4709_s7 + $0x198] sm:$0xff] }
 0x183   : > { %v1074_v54 = vpop.f32.mrf.mxu3  ;;  %1540 = vmatpush.msrb.mxu0 %v1404_v51 }
 0x184   : > { %1563 = vmatpush.msra.mxu3 %v1436_v52  ;;  %1592 = vmatpush.msra.mxu1 %v1456_v57  ;;  %v2661_v52 = vld [vmem:[%s4709_s7 + $0x220] sm:$0xff]  ;;  %v2642_v57 = vld [vmem:[%s4709_s7 + $0x188] sm:$0xff] }
 0x185   : > { %1541 = vmatpush.msrb.mxu0 %v1402_v55 }
 0x186   : > { %1564 = vmatpush.msra.mxu3 %v1434_v56  ;;  %1355 = vmatmul.f32.vlgmr.msra.gmra.mxu0 %v3514_v32  ;;  %v2659_v56 = vld [vmem:[%s4709_s7 + $0x210] sm:$0xff] }
 0x187   : > { %1542 = vmatpush.msrb.mxu0 %v1400_v58  ;;  %1593 = vmatpush.msra.mxu1 %v1454_v62  ;;  %v1628_v58 = vld [vmem:[%s4709_s7 + $0xa8] sm:$0xff]  ;;  %v2640_v62 = vld [vmem:[%s4709_s7 + $0x178] sm:$0xff] }
 0x188   : > { %1565 = vmatpush.msra.mxu3 %v1432_v59 }
 0x189   : > { %1481 = vmatmul.f32.vlgmr.msrb.gmra.mxu1 %v3506_v28  ;;  %1543 = vmatpush.msrb.mxu0 %v1398_v60  ;;  %v2657_v60 = vld [vmem:[%s4709_s7 + $0x200] sm:$0xff] }
 0x18a   : > { %1566 = vmatpush.msra.mxu3 %v1430_v61  ;;  %1594 = vmatpush.msra.mxu1 %v1452_v1  ;;  %v2671_v61 = vld [vmem:[%s4709_s7 + $0x270] sm:$0xff]  ;;  %v2669_v1 = vld [vmem:[%s4709_s7 + $0x260] sm:$0xff] }
 0x18b   : > { %v1148_v2 = vpop.f32.mrf.mxu3  ;;  %1544 = vmatpush.msrb.mxu0 %v1396_v63  ;;  %v1626_v63 = vld [vmem:[%s4709_s7 + $0x98] sm:$0xff] }
 0x18c   : > { %v1156_v3 = vmax.f32 %v1071_v39, %v1148_v2  ;;  %1567 = vmatpush.msra.mxu3 %v1428_v0  ;;  %1595 = vmatpush.msra.mxu1 %v1450_v11  ;;  %v2655_v0 = vld [vmem:[%s4709_s7 + $0x1f0] sm:$0xff]  ;;  %v2638_v2 = vld [vmem:[%s4709_s7 + $0x168] sm:$0xff] }
 0x18d   : > { %1545 = vmatpush.msrb.mxu0 %v1394_v5  ;;  %v2667_v5 = vld [vmem:[%s4709_s7 + $0x250] sm:$0xff]  ;;  %v2634_v11 = vld [vmem:[%s4709_s7 + $0x148] sm:$0xff] }
 0x18e   : > { %2625 = vmatmul.msk.f32.vlgmr.msra.gmra.mxu2 %vm1240_vm5, %v1156_v3  ;;  %2629 = vmatmul.msk.f32.vlgmr.msrb.gmra.mxu3 %vm1240_vm5, %v1156_v3 }
 0x18f   : > { %1488 = vmatpush.msra.mxu2 %v1447_v4  ;;  %1358 = vmatmul.f32.gmra.mxu0 %v3551_v47  ;;  %v2653_v4 = vld [vmem:[%s4709_s7 + $0x1e0] sm:$0xff] }
 0x190   : > { %1568 = vmatpush.msra.mxu3 %v1426_v6  ;;  %1546 = vmatpush.msrb.mxu0 %v1392_v8  ;;  %v2636_v6 = vld [vmem:[%s4709_s7 + $0x158] sm:$0xff] }
 0x191   : > { %1484 = vmatmul.f32.gmra.mxu1 %v3543_v43  ;;  %1489 = vmatpush.msra.mxu2 %v1445_v7  ;;  %v1622_v8 = vld [vmem:[%s4709_s7 + $0x78] sm:$0xff] }
 0x192   : > { %1569 = vmatpush.msra.mxu3 %v1424_v9  ;;  %1547 = vmatpush.msrb.mxu0 %v1390_v12  ;;  %v2651_v9 = vld [vmem:[%s4709_s7 + $0x1d0] sm:$0xff] }
 0x193   : > { %v1151_v15 = vpop.f32.mrf.mxu3  ;;  %1490 = vmatpush.msra.mxu2 %v1443_v10  ;;  %1742 = vmatpush.msrb.mxu1 %v2664_v34  ;;  %v2665_v10 = vld [vmem:[%s4709_s7 + $0x240] sm:$0xff]  ;;  %v2699_v34 = vld [vmem:[%s4709_s7 + $0x330] sm:$0xff] }
 0x194   : > { %v1159_v17 = vmax.f32 %v1074_v54, %v1151_v15  ;;  %1570 = vmatpush.msra.mxu3 %v1422_v13  ;;  %1548 = vmatpush.msrb.mxu0 %v1388_v16  ;;  %v1630_v54 = vld [vmem:[%s4709_s7 + $0xb8] sm:$0xff]  ;;  %v1620_v13 = vld [vmem:[%s4709_s7 + $0x68] sm:$0xff]  ;;  %v2707_v15 = vld [vmem:[%s4709_s7 + $0x370] sm:$0xff] }
 0x195   : > { %1491 = vmatpush.msra.mxu2 %v1441_v14  ;;  %1743 = vmatpush.msrb.mxu1 %v2662_v35  ;;  %v2672_v14 = vld [vmem:[%s4709_s7 + $0x278] sm:$0xff]  ;;  %v2649_v16 = vld [vmem:[%s4709_s7 + $0x1c0] sm:$0xff] }
 0x196   : > { %2626 = vmatmul.msk.f32.gmra.mxu2 %vm1240_vm5, %v1159_v17  ;;  %2630 = vmatmul.msk.f32.gmra.mxu3 %vm1240_vm5, %v1159_v17  ;;  %v2641_v35 = vld [vmem:[%s4709_s7 + $0x180] sm:$0xff] }
 0x197   : > { %1492 = vmatpush.msra.mxu2 %v1439_v18  ;;  %1549 = vmatpush.msrb.mxu0 %v1386_v19  ;;  %v2670_v18 = vld [vmem:[%s4709_s7 + $0x268] sm:$0xff]  ;;  %v2705_v19 = vld [vmem:[%s4709_s7 + $0x360] sm:$0xff] }
 0x198   : > { %1571 = vmatpush.msra.mxu3 %v1420_v20  ;;  %1550 = vmatmul.f32.vlgmr.msrb.gmra.mxu0 %v3506_v28  ;;  %v1425_v28 = vld [vmem:[%s4708_s6 + $0x140] sm:$0xff]  ;;  %s2815_s6 = scalar_lea.hbm %s2814_s24, 1 }
 0x199   : > { %1493 = vmatpush.msra.mxu2 %v1437_v21  ;;  %2631 = vmatmul.msk.f32.vlgmr.msra.gmra.mxu1 %vm1240_vm5, %v1156_v3  ;;  %p2816_p11 = scmp.ne.s32.totalorder %s2814_s24, %s2815_s6  ;;  %p2821_p1 = scmp.lt.s32.totalorder %s2819_s26, %s2815_s6 }
 0x19a   : > { %1572 = vmatpush.msra.mxu3 %v1418_v22  ;;  %1744 = vmatpush.msrb.mxu1 %v2660_v36  ;;  %v2647_v22 = vld [vmem:[%s4709_s7 + $0x1b0] sm:$0xff]  ;;  %v1610_v36 = vld [vmem:[%s4709_s7 + $0x18] sm:$0xff] }
 0x19b   : > { %1494 = vmatpush.msra.mxu2 %v1435_v23  ;;  %1734 = vmatpush.msra.mxu0 %v2671_v61  ;;  %v1616_v23 = vld [vmem:[%s4709_s7 + $0x48] sm:$0xff]  ;;  %p2817_p12 = pnand %p2816_p11, %p3006_p5  ;;  %p2822_p2 = por %p2821_p1, %p2820_p0 }
 0x19c   : > { %1824 = vmatpush.msrb.mxu3 %v1638_v42  ;;  %v1608_v42 = vld [vmem:[%s4709_s7 + $0x8] sm:$0xff] }
 0x19d   : > { %1495 = vmatpush.msra.mxu2 %v1433_v24  ;;  %1735 = vmatpush.msra.mxu0 %v2669_v1  ;;  %v2668_v24 = vld [vmem:[%s4709_s7 + $0x258] sm:$0xff]  ;;  %v1639_v1 = vld [vmem:[%s4709_s7 + $0x100] sm:$0xff]  ;;  %p2818_p13 = pneg %p2817_p12 }
 0x19e   : > { %2627 = vmatmul.msk.f32.vlgmr.msrb.gmra.mxu2 %vm1240_vm5, %v1156_v3  ;;  %1573 = vmatmul.f32.vlgmr.msra.gmra.mxu3 %v3514_v32  ;;  %v1624_v3 = vld [vmem:[%s4709_s7 + $0x88] sm:$0xff] }
 0x19f   : > { %1496 = vmatpush.msra.mxu2 %v1431_v25  ;;  %1825 = vmatpush.msrb.mxu3 %v1636_v44  ;;  %v2703_v25 = vld [vmem:[%s4709_s7 + $0x350] sm:$0xff]  ;;  %p2823_p3 = pnand %p2822_p2, %p2818_p13 }
 0x1a0   : > { %1553 = vmatmul.f32.gmra.mxu0 %v3543_v43  ;;  %v2650_v43 = vld [vmem:[%s4709_s7 + $0x1c8] sm:$0xff] }
 0x1a1   : > { %1497 = vmatpush.msra.mxu2 %v1429_v26  ;;  %2632 = vmatmul.msk.f32.gmra.mxu1 %vm1240_vm5, %v1159_v17  ;;  %v2645_v26 = vld [vmem:[%s4709_s7 + $0x1a0] sm:$0xff] }
 0x1a2   : > { %1736 = vmatpush.msra.mxu0 %v2667_v5 }
 0x1a3   : > { %1498 = vmatpush.msra.mxu2 %v1427_v27  ;;  %v1614_v27 = vld [vmem:[%s4709_s7 + $0x38] sm:$0xff] }
 0x1a4   : > { %1737 = vmatpush.msra.mxu0 %v2665_v10 }
 0x1a5   : > { %1499 = vmatpush.msra.mxu2 %v1425_v28  ;;  %v2666_v28 = vld [vmem:[%s4709_s7 + $0x248] sm:$0xff] }
 0x1a6   : > { %2628 = vmatmul.msk.f32.gmra.mxu2 %vm1240_vm5, %v1159_v17  ;;  %1576 = vmatmul.f32.gmra.mxu3 %v3551_v47  ;;  %v1618_v17 = vld [vmem:[%s4709_s7 + $0x58] sm:$0xff] }
 0x1a7   : > { %1500 = vmatpush.msra.mxu2 %v1423_v29  ;;  %1774 = vmatpush.msrb.mxu0 %v2672_v14  ;;  %v2701_v29 = vld [vmem:[%s4709_s7 + $0x340] sm:$0xff] }
 0x1a9   : > { %1501 = vmatpush.msra.mxu2 %v1421_v30  ;;  %1775 = vmatpush.msrb.mxu0 %v2670_v18  ;;  %v2643_v30 = vld [vmem:[%s4709_s7 + $0x190] sm:$0xff] }
 0x1ab   : > { %1502 = vmatpush.msra.mxu2 %v1419_v31  ;;  %1776 = vmatpush.msrb.mxu0 %v2668_v24  ;;  %v1612_v31 = vld [vmem:[%s4709_s7 + $0x28] sm:$0xff] }
 0x1ad   : > { %1503 = vmatpush.msra.mxu2 %v1417_v33  ;;  %1777 = vmatpush.msrb.mxu0 %v2666_v28 }
 0x1ae   : > { %1504 = vmatmul.f32.vlgmr.msra.gmra.mxu2 %v3514_v32  ;;  %v2658_v32 = vld [vmem:[%s4709_s7 + $0x208] sm:$0xff] }
 0x1af   : > { %1745 = vmatpush.msrb.mxu1 %v2658_v32  ;;  %1702 = vmatpush.msrb.mxu2 %v2663_v48  ;;  %v2697_v32 = vld [vmem:[%s4709_s7 + $0x320] sm:$0xff]  ;;  %v2635_v48 = vld [vmem:[%s4709_s7 + $0x150] sm:$0xff] }
 0x1b1   : > { %1746 = vmatpush.msrb.mxu1 %v2656_v37  ;;  %1703 = vmatpush.msrb.mxu2 %v2661_v52 }
 0x1b3   : > { %1747 = vmatpush.msrb.mxu1 %v2654_v38  ;;  %1704 = vmatpush.msrb.mxu2 %v2659_v56  ;;  %v2639_v38 = vld [vmem:[%s4709_s7 + $0x170] sm:$0xff] }
 0x1b5   : > { %1748 = vmatpush.msrb.mxu1 %v2652_v41  ;;  %1705 = vmatpush.msrb.mxu2 %v2657_v60 }
 0x1b6   : > { %1507 = vmatmul.f32.gmra.mxu2 %v3551_v47  ;;  %v1634_v47 = vld [vmem:[%s4709_s7 + $0xd8] sm:$0xff] }
 0x1b7   : > { %1749 = vmatpush.msrb.mxu1 %v2650_v43  ;;  %1826 = vmatpush.msrb.mxu3 %v1634_v47  ;;  %v2695_v43 = vld [vmem:[%s4709_s7 + $0x310] sm:$0xff]  ;;  %v2693_v47 = vld [vmem:[%s4709_s7 + $0x300] sm:$0xff] }
 0x1b8   : > { %1706 = vmatpush.msrb.mxu2 %v2655_v0 }
 0x1b9   : > { %1750 = vmatpush.msrb.mxu1 %v2648_v46  ;;  %1827 = vmatpush.msrb.mxu3 %v1632_v50  ;;  %v2637_v46 = vld [vmem:[%s4709_s7 + $0x160] sm:$0xff] }
 0x1ba   : > { %1707 = vmatpush.msrb.mxu2 %v2653_v4  ;;  %v2633_v50 = vld [vmem:[%s4709_s7 + $0x140] sm:$0xff] }
 0x1bb   : > { %1751 = vmatpush.msrb.mxu1 %v2646_v49  ;;  %1828 = vmatpush.msrb.mxu3 %v1630_v54  ;;  %v2691_v49 = vld [vmem:[%s4709_s7 + $0x2f0] sm:$0xff]  ;;  %v2689_v54 = vld [vmem:[%s4709_s7 + $0x2e0] sm:$0xff] }
 0x1bc   : > { %1708 = vmatpush.msrb.mxu2 %v2651_v9 }
 0x1bd   : > { %1752 = vmatpush.msrb.mxu1 %v2644_v53  ;;  %1829 = vmatpush.msrb.mxu3 %v1628_v58  ;;  %v1645_v53 = vld [vmem:[%s4709_s7 + $0x130] sm:$0xff] }
 0x1be   : > { %1709 = vmatpush.msrb.mxu2 %v2649_v16  ;;  %v2687_v58 = vld [vmem:[%s4709_s7 + $0x2d0] sm:$0xff] }
 0x1bf   : > { %1753 = vmatpush.msrb.mxu1 %v2642_v57  ;;  %1830 = vmatpush.msrb.mxu3 %v1626_v63  ;;  %v1643_v57 = vld [vmem:[%s4709_s7 + $0x120] sm:$0xff] }
 0x1c0   : > { %1710 = vmatpush.msrb.mxu2 %v2647_v22  ;;  %v2685_v63 = vld [vmem:[%s4709_s7 + $0x2c0] sm:$0xff] }
 0x1c1   : > { %1754 = vmatpush.msrb.mxu1 %v2640_v62  ;;  %1831 = vmatpush.msrb.mxu3 %v1624_v3  ;;  %v1641_v62 = vld [vmem:[%s4709_s7 + $0x110] sm:$0xff]  ;;  %v2681_v3 = vld [vmem:[%s4709_s7 + $0x2a0] sm:$0xff] }
 0x1c2   : > { %1711 = vmatpush.msrb.mxu2 %v2645_v26 }
 0x1c3   : > { %1755 = vmatpush.msrb.mxu1 %v2638_v2  ;;  %1832 = vmatpush.msrb.mxu3 %v1622_v8  ;;  %v2683_v2 = vld [vmem:[%s4709_s7 + $0x2b0] sm:$0xff] }
 0x1c4   : > { %1712 = vmatpush.msrb.mxu2 %v2643_v30  ;;  %v2679_v8 = vld [vmem:[%s4709_s7 + $0x290] sm:$0xff] }
 0x1c5   : > { %1756 = vmatpush.msrb.mxu1 %v2636_v6  ;;  %1833 = vmatpush.msrb.mxu3 %v1620_v13 }
 0x1c6   : > { %1713 = vmatpush.msrb.mxu2 %v2641_v35  ;;  %v1627_v35 = vld [vmem:[%s4709_s7 + $0xa0] sm:$0xff] }
 0x1c7   : > { %1757 = vmatpush.msrb.mxu1 %v2634_v11  ;;  %1834 = vmatpush.msrb.mxu3 %v1618_v17 }
 0x1c8   : > { %1714 = vmatpush.msrb.mxu2 %v2639_v38  ;;  %v1646_v38 = vld [vmem:[%s4709_s7 + $0x138] sm:$0xff] }
 0x1c9   : > { %1914 = vmatpush.msra.mxu1 %v2707_v15  ;;  %1835 = vmatpush.msrb.mxu3 %v1616_v23  ;;  %v2677_v15 = vld [vmem:[%s4709_s7 + $0x280] sm:$0xff] }
 0x1ca   : > { %1715 = vmatpush.msrb.mxu2 %v2637_v46  ;;  %v1642_v46 = vld [vmem:[%s4709_s7 + $0x118] sm:$0xff] }
 0x1cb   : > { %1915 = vmatpush.msra.mxu1 %v2705_v19  ;;  %1836 = vmatpush.msrb.mxu3 %v1614_v27 }
 0x1cc   : > { %1716 = vmatpush.msrb.mxu2 %v2635_v48 }
 0x1cd   : > { %1916 = vmatpush.msra.mxu1 %v2703_v25  ;;  %1837 = vmatpush.msrb.mxu3 %v1612_v31  ;;  %v1637_v25 = vld [vmem:[%s4709_s7 + $0xf0] sm:$0xff] }
 0x1ce   : > { %1717 = vmatpush.msrb.mxu2 %v2633_v50  ;;  %v1629_v31 = vld [vmem:[%s4709_s7 + $0xb0] sm:$0xff]  ;;  %v1615_v50 = vld [vmem:[%s4709_s7 + $0x40] sm:$0xff] }
 0x1cf   : > { %1917 = vmatpush.msra.mxu1 %v2701_v29  ;;  %1838 = vmatpush.msrb.mxu3 %v1610_v36  ;;  %v1635_v29 = vld [vmem:[%s4709_s7 + $0xe0] sm:$0xff] }
 0x1d0   : > { %1816 = vmatpush.msra.mxu2 %v1645_v53  ;;  %v2715_v53 = vld [vmem:[%s4709_s7 + $0x3b0] sm:$0xff] }
 0x1d1   : > { %1918 = vmatpush.msra.mxu1 %v2699_v34  ;;  %1839 = vmatpush.msrb.mxu3 %v1608_v42  ;;  %v1621_v42 = vld [vmem:[%s4709_s7 + $0x70] sm:$0xff] }
 0x1d2   : > { %1817 = vmatpush.msra.mxu2 %v1643_v57  ;;  %v2713_v57 = vld [vmem:[%s4709_s7 + $0x3a0] sm:$0xff] }
 0x1d3   : > { %1919 = vmatpush.msra.mxu1 %v2697_v32  ;;  %v1623_v32 = vld [vmem:[%s4709_s7 + $0x80] sm:$0xff] }
 0x1d4   : > { %1818 = vmatpush.msra.mxu2 %v1641_v62  ;;  %v2709_v62 = vld [vmem:[%s4709_s7 + $0x380] sm:$0xff] }
 0x1d5   : > { %1920 = vmatpush.msra.mxu1 %v2695_v43  ;;  %v1644_v43 = vld [vmem:[%s4709_s7 + $0x128] sm:$0xff] }
 0x1d6   : > { %1819 = vmatpush.msra.mxu2 %v1639_v1  ;;  %v2716_v1 = vld [vmem:[%s4709_s7 + $0x3b8] sm:$0xff] }
 0x1d7   : > { %1921 = vmatpush.msra.mxu1 %v2693_v47  ;;  %v1617_v47 = vld [vmem:[%s4709_s7 + $0x50] sm:$0xff] }
 0x1d9   : > { %1922 = vmatpush.msra.mxu1 %v2691_v49  ;;  %v1640_v49 = vld [vmem:[%s4709_s7 + $0x108] sm:$0xff] }
 0x1db   : > { %1923 = vmatpush.msra.mxu1 %v2689_v54  ;;  %v1613_v54 = vld [vmem:[%s4709_s7 + $0x30] sm:$0xff] }
 0x1dd   : > { %1924 = vmatpush.msra.mxu1 %v2687_v58  ;;  %v1611_v58 = vld [vmem:[%s4709_s7 + $0x20] sm:$0xff] }
 0x1df   : > { %1925 = vmatpush.msra.mxu1 %v2685_v63  ;;  %v1607_v63 = vld [vmem:[%s4709_s7] sm:$0xff] }
 0x1e1   : > { %1926 = vmatpush.msra.mxu1 %v2683_v2  ;;  %v2706_v2 = vld [vmem:[%s4709_s7 + $0x368] sm:$0xff] }
 0x1e3   : > { %1927 = vmatpush.msra.mxu1 %v2681_v3  ;;  %v2714_v3 = vld [vmem:[%s4709_s7 + $0x3a8] sm:$0xff] }
 0x1e5   : > { %1928 = vmatpush.msra.mxu1 %v2679_v8  ;;  %v2702_v8 = vld [vmem:[%s4709_s7 + $0x348] sm:$0xff] }
 0x1e7   : > { %1929 = vmatpush.msra.mxu1 %v2677_v15  ;;  %v2696_v15 = vld [vmem:[%s4709_s7 + $0x318] sm:$0xff] }
 0x1f3   : > { %v3724_v39 = vpop.f32.mrf.mxu0 }
 0x1f6   : > { %v3726_v40 = vpop.f32.mrf.mxu1 }
 0x1f7   : > { %v1288_v23 = vadd.f32 %v3726_v40, %v3724_v39  ;;  %v1633_v40 = vld [vmem:[%s4709_s7 + $0xd0] sm:$0xff] }
 0x1f9   : > { %v3740_v45 = vpop.f32.mrf.mxu3 }
 0x1fb   : > { %v3757_v51 = vpop.f32.mrf.mxu0 }
 0x1fe   : > { %v3768_v55 = vpop.f32.mrf.mxu1 }
 0x202   : > { %v3779_v59 = vpop.f32.mrf.mxu3 }
 0x203   : > { %v3814_v7 = vpop.f32.mrf.mxu0 }
 0x204   : > { %v1357_v4 = vadd.f32 %v3814_v7, %v3740_v45 }
 0x206   : > { %v3828_v12 = vpop.f32.mrf.mxu1 }
 0x20c   : > { %v1359_v33 = vpop.f32.mrf.mxu0 }
 0x20d   : > { %v1360_v11 = vadd.f32 %v1359_v33, %v3779_v59 }
 0x20e   : > { %v3897_v37 = vpop.f32.mrf.mxu1 }
 0x211   : > { %v3851_v20 = vpop.f32.mrf.mxu2  ;;  %v3853_v21 = vpop.f32.mrf.mxu3 }
 0x212   : > { %v1311_v27 = vadd.f32 %v3851_v20, %v1288_v23  ;;  %v2678_v23 = vld [vmem:[%s4709_s7 + $0x288] sm:$0xff] }
 0x215   : > { %v1551_v52 = vpop.f32.mrf.mxu0 }
 0x216   : > { %v1597_v60 = vpop.f32.mrf.mxu1 }
 0x219   : > { %v3902_v41 = vpop.f32.mrf.mxu2  ;;  %v3910_v44 = vpop.f32.mrf.mxu3 }
 0x21d   : > { %v1554_v9 = vpop.f32.mrf.mxu0 }
 0x21e   : > { %v1600_v16 = vpop.f32.mrf.mxu1 }
 0x221   : > { %v1379_v56 = vpop.f32.mrf.mxu2  ;;  %v1574_v61 = vpop.f32.mrf.mxu3 }
 0x222   : > { %v1575_v0 = vadd.f32 %v1574_v61, %v1551_v52  ;;  %v1380_v13 = vadd.f32 %v1379_v56, %v1357_v4  ;;  %v1609_v61 = vld [vmem:[%s4709_s7 + $0x10] sm:$0xff]  ;;  %v2704_v4 = vld [vmem:[%s4709_s7 + $0x358] sm:$0xff] }
 0x224   : > { %v1598_v5 = vadd.f32 %v1597_v60, %v1575_v0  ;;  %v2711_v60 = vld [vmem:[%s4709_s7 + $0x390] sm:$0xff]  ;;  %v2708_v0 = vld [vmem:[%s4709_s7 + $0x378] sm:$0xff] }
 0x226   : > { %v3963_v45 = vmax.f32 %v1380_v13, %v1598_v5 }
 0x228   : > { %v1695_v59 = vrot.slane %v3963_v45, 1 }
 0x229   : > { %v1382_v6 = vpop.f32.mrf.mxu2  ;;  %v1577_v10 = vpop.f32.mrf.mxu3 }
 0x22a   : > { %v1578_v14 = vadd.f32 %v1577_v10, %v1554_v9  ;;  %v1383_v7 = vadd.f32 %v1382_v6, %v1360_v11  ;;  %v2712_v6 = vld [vmem:[%s4709_s7 + $0x398] sm:$0xff]  ;;  %v2710_v9 = vld [vmem:[%s4709_s7 + $0x388] sm:$0xff]  ;;  %v1908_v10 = vrot.slane %v3963_v45, 2 }
 0x22b   : > { %v2700_v11 = vld [vmem:[%s4709_s7 + $0x338] sm:$0xff] }
 0x22c   : > { %v1601_v17 = vadd.f32 %v1600_v16, %v1578_v14  ;;  %v2698_v14 = vld [vmem:[%s4709_s7 + $0x328] sm:$0xff] }
 0x22d   : > { %v2694_v16 = vld [vmem:[%s4709_s7 + $0x308] sm:$0xff] }
 0x22e   : > { %v3965_v18 = vmax.f32 %v1383_v7, %v1601_v17  ;;  %v2690_v7 = vld [vmem:[%s4709_s7 + $0x2e8] sm:$0xff]  ;;  %v2688_v17 = vld [vmem:[%s4709_s7 + $0x2d8] sm:$0xff] }
 0x230   : > { %v1696_v19 = vrot.slane %v3965_v18, 1  ;;  %v1909_v5 = vrot.slane %v3965_v18, 2  ;;  %v2686_v18 = vld [vmem:[%s4709_s7 + $0x2c8] sm:$0xff] }
 0x231   : > { %v1505_v22 = vpop.f32.mrf.mxu2 }
 0x232   : > { %v1506_v24 = vadd.f32 %v1505_v22, %v3828_v12  ;;  %v1697_v26 = vsel %vm652_vm2, %v1695_v59, %v1696_v19  ;;  %v1631_v12 = vld [vmem:[%s4709_s7 + $0xc0] sm:$0xff]  ;;  %v1910_v13 = vsel %vm665_vm0, %v1908_v10, %v1909_v5  ;;  %v2684_v19 = vld [vmem:[%s4709_s7 + $0x2b8] sm:$0xff]  ;;  %v2682_v22 = vld [vmem:[%s4709_s7 + $0x2a8] sm:$0xff] }
 0x233   : > { %2673 = vmatmul.msk.f32.vlgmr.msra.gmra.mxu0 %vm1699_vm6, %v1697_v26  ;;  %v2680_v59 = vld [vmem:[%s4709_s7 + $0x298] sm:$0xff] }
 0x234   : > { %v1529_v28 = vadd.f32 %v3853_v21, %v1506_v24  ;;  %1784 = vmatpush.msra.mxu0 %v1637_v25  ;;  %v1291_v21 = vadd.f32 %v3768_v55, %v3757_v51  ;;  %v1625_v51 = vld [vmem:[%s4709_s7 + $0x90] sm:$0xff] }
 0x236   : > { %v3982_v39 = vmax.f32 %v1311_v27, %v1529_v28  ;;  %1785 = vmatpush.msra.mxu0 %v1635_v29  ;;  %v1314_v33 = vadd.f32 %v3902_v41, %v1291_v21 }
 0x238   : > { %1840 = vmatmul.f32.vlgmr.msrb.gmra.mxu3 %v3982_v39  ;;  %1786 = vmatpush.msra.mxu0 %v1633_v40  ;;  %v1905_v52 = vrot.slane %v3982_v39, 2 }
 0x239   : > { %v1508_v20 = vpop.f32.mrf.mxu2 }
 0x23a   : > { %v1509_v30 = vadd.f32 %v1508_v20, %v3897_v37  ;;  %1787 = vmatpush.msra.mxu0 %v1631_v12  ;;  %v1692_v37 = vrot.slane %v3982_v39, 1  ;;  %v4136_v20 = vld [vmem:[%s4661_s8] sm:$0x3] }
 0x23b   : > { %2674 = vmatmul.msk.f32.vlgmr.msrb.gmra.mxu0 %vm1699_vm6, %v1697_v26 }
 0x23c   : > { %v1532_v34 = vadd.f32 %v3910_v44, %v1509_v30  ;;  %1788 = vmatpush.msra.mxu0 %v1629_v31  ;;  %v1619_v44 = vld [vmem:[%s4709_s7 + $0x60] sm:$0xff] }
 0x23e   : > { %v1605_v36 = vmax.f32 %v1314_v33, %v1532_v34  ;;  %1789 = vmatpush.msra.mxu0 %v1627_v35  ;;  %v1998_v34 = vperm.slane %v4136_v20, 0 }
 0x240   : > { %v1693_v55 = vrot.slane %v1605_v36, 1  ;;  %1790 = vmatpush.msra.mxu0 %v1625_v51  ;;  %v1906_v48 = vrot.slane %v1605_v36, 2 }
 0x242   : > { %v1694_v41 = vsel %vm652_vm2, %v1692_v37, %v1693_v55  ;;  %1791 = vmatpush.msra.mxu0 %v1623_v32  ;;  %v1907_v56 = vsel %vm665_vm0, %v1905_v52, %v1906_v48  ;;  %v4142_v55 = vld [vmem:[%s4662_s9] sm:$0xf]  ;;  %v2128_v32 = vld [vmem:[%s4664_s11 + $0xf8] sm:$0xff]  ;;  %v2110_v48 = vld [vmem:[%s4664_s11 + $0x68] sm:$0xff] }
 0x243   : > { %1718 = vmatmul.f32.vlgmr.msrb.gmra.mxu2 %v1694_v41  ;;  %1758 = vmatmul.f32.vlgmr.msrb.gmra.mxu1 %v1694_v41  ;;  %v2200_v37 = vld [vmem:[%s4665_s12 + $0xf8] sm:$0xff]  ;;  %v2199_v41 = vld [vmem:[%s4665_s12 + $0xf0] sm:$0xff] }
 0x244   : > { %1856 = vmatpush.msrb.mxu2 %v1646_v38  ;;  %1792 = vmatpush.msra.mxu0 %v1621_v42  ;;  %v2127_v38 = vld [vmem:[%s4664_s11 + $0xf0] sm:$0xff]  ;;  %v2198_v42 = vld [vmem:[%s4665_s12 + $0xe8] sm:$0xff]  ;;  %v2196_v52 = vld [vmem:[%s4665_s12 + $0xd8] sm:$0xff] }
 0x246   : > { %1857 = vmatpush.msrb.mxu2 %v1644_v43  ;;  %1793 = vmatpush.msra.mxu0 %v1619_v44  ;;  %v2112_v43 = vld [vmem:[%s4664_s11 + $0x78] sm:$0xff]  ;;  %v2126_v44 = vld [vmem:[%s4664_s11 + $0xe8] sm:$0xff] }
 0x247   : > { %2129 = vmatpush.msrb.mxu1 %v2112_v43  ;;  %v2170_v43 = vld [vmem:[%s4665_s12 + $0x8] sm:$0xff] }
 0x248   : > { %1858 = vmatpush.msrb.mxu2 %v1642_v46  ;;  %1794 = vmatpush.msra.mxu0 %v1617_v47  ;;  %v2111_v46 = vld [vmem:[%s4664_s11 + $0x70] sm:$0xff]  ;;  %v2197_v47 = vld [vmem:[%s4665_s12 + $0xe0] sm:$0xff] }
 0x249   : > { %2130 = vmatpush.msrb.mxu1 %v2111_v46  ;;  %v2186_v46 = vld [vmem:[%s4665_s12 + $0x88] sm:$0xff] }
 0x24a   : > { %1859 = vmatpush.msrb.mxu2 %v1640_v49  ;;  %1795 = vmatpush.msra.mxu0 %v1615_v50  ;;  %v2125_v49 = vld [vmem:[%s4664_s11 + $0xe0] sm:$0xff] }
 0x24b   : > { %2675 = vmatmul.msk.f32.vlgmr.msra.gmra.mxu2 %vm1699_vm6, %v3963_v45  ;;  %1930 = vmatmul.f32.vlgmr.msra.gmra.mxu1 %v1907_v56  ;;  %v2051_v50 = vld [vmem:[%s4663_s10] sm:$0xf] }
 0x24c   : > { %1946 = vmatpush.msra.mxu2 %v2715_v53  ;;  %1796 = vmatpush.msra.mxu0 %v1613_v54  ;;  %v2124_v53 = vld [vmem:[%s4664_s11 + $0xd8] sm:$0xff]  ;;  %v2109_v54 = vld [vmem:[%s4664_s11 + $0x60] sm:$0xff] }
 0x24d   : > { %2131 = vmatpush.msrb.mxu1 %v2110_v48  ;;  %v2185_v48 = vld [vmem:[%s4665_s12 + $0x80] sm:$0xff] }
 0x24e   : > { %1947 = vmatpush.msra.mxu2 %v2713_v57  ;;  %1797 = vmatpush.msra.mxu0 %v1611_v58  ;;  %v2123_v58 = vld [vmem:[%s4664_s11 + $0xd0] sm:$0xff] }
 0x24f   : > { %2132 = vmatpush.msrb.mxu1 %v2109_v54  ;;  %v2256_v54 = vld [vmem:[%s4666_s13 + $0x70] sm:$0xff] }
 0x250   : > { %1948 = vmatpush.msra.mxu2 %v2711_v60  ;;  %1798 = vmatpush.msra.mxu0 %v1609_v61  ;;  %v2108_v60 = vld [vmem:[%s4664_s11 + $0x58] sm:$0xff]  ;;  %v2194_v61 = vld [vmem:[%s4665_s12 + $0xc8] sm:$0xff] }
 0x251   : > { %2133 = vmatpush.msrb.mxu1 %v2108_v60 }
 0x252   : > { %1949 = vmatpush.msra.mxu2 %v2709_v62  ;;  %1799 = vmatpush.msra.mxu0 %v1607_v63  ;;  %v2122_v62 = vld [vmem:[%s4664_s11 + $0xc8] sm:$0xff]  ;;  %v2107_v63 = vld [vmem:[%s4664_s11 + $0x50] sm:$0xff] }
 0x253   : > { %2676 = vmatmul.msk.f32.vlgmr.msrb.gmra.mxu2 %vm1699_vm6, %v3963_v45  ;;  %1800 = vmatmul.f32.vlgmr.msra.gmra.mxu0 %v3982_v39  ;;  %v2692_v45 = vld [vmem:[%s4709_s7 + $0x2f8] sm:$0xff] }
 0x254   : > { %1954 = vmatpush.msrb.mxu2 %v2708_v0  ;;  %1986 = vmatpush.msrb.mxu0 %v2716_v1  ;;  %v2193_v1 = vld [vmem:[%s4665_s12 + $0xc0] sm:$0xff] }
 0x255   : > { %2134 = vmatpush.msrb.mxu1 %v2107_v63  ;;  %v2752_v63 = vld [vmem:[%s4666_s13 + $0x168] sm:$0xff] }
 0x256   : > { %1955 = vmatpush.msrb.mxu2 %v2706_v2  ;;  %1987 = vmatpush.msrb.mxu0 %v2714_v3  ;;  %v2121_v3 = vld [vmem:[%s4664_s11 + $0xc0] sm:$0xff] }
 0x258   : > { %1956 = vmatpush.msrb.mxu2 %v2704_v4  ;;  %1988 = vmatpush.msrb.mxu0 %v2712_v6  ;;  %v2106_v4 = vld [vmem:[%s4664_s11 + $0x48] sm:$0xff] }
 0x259   : > { %2135 = vmatpush.msrb.mxu1 %v2106_v4  ;;  %v2734_v4 = vld [vmem:[%s4666_s13 + $0xd8] sm:$0xff] }
 0x25a   : > { %1957 = vmatpush.msrb.mxu2 %v2702_v8  ;;  %1989 = vmatpush.msrb.mxu0 %v2710_v9  ;;  %v2192_v8 = vld [vmem:[%s4665_s12 + $0xb8] sm:$0xff] }
 0x25b   : > { %2717 = vmatmul.msk.f32.vlgmr.msra.gmra.mxu2 %vm1699_vm6, %v1910_v13  ;;  %2718 = vmatmul.msk.f32.vlgmr.msrb.gmra.mxu0 %vm1699_vm6, %v1910_v13  ;;  %v2120_v13 = vld [vmem:[%s4664_s11 + $0xb8] sm:$0xff] }
 0x25c   : > { %1958 = vmatpush.msrb.mxu2 %v2700_v11  ;;  %v1999_v11 = vperm.slane %v4136_v20, 1  ;;  %v2118_v20 = vld [vmem:[%s4664_s11 + $0xa8] sm:$0xff] }
 0x25e   : > { %1959 = vmatpush.msrb.mxu2 %v2698_v14  ;;  %v2191_v14 = vld [vmem:[%s4665_s12 + $0xb0] sm:$0xff] }
 0x260   : > { %1960 = vmatpush.msrb.mxu2 %v2696_v15 }
 0x262   : > { %1961 = vmatpush.msrb.mxu2 %v2694_v16  ;;  %v2119_v16 = vld [vmem:[%s4664_s11 + $0xb0] sm:$0xff] }
 0x264   : > { %1962 = vmatpush.msrb.mxu2 %v2692_v45 }
 0x266   : > { %1963 = vmatpush.msrb.mxu2 %v2690_v7 }
 0x268   : > { %1964 = vmatpush.msrb.mxu2 %v2688_v17  ;;  %v2184_v17 = vld [vmem:[%s4665_s12 + $0x78] sm:$0xff] }
 0x26a   : > { %1965 = vmatpush.msrb.mxu2 %v2686_v18  ;;  %v2183_v18 = vld [vmem:[%s4665_s12 + $0x70] sm:$0xff] }
 0x26c   : > { %1966 = vmatpush.msrb.mxu2 %v2684_v19  ;;  %v2182_v19 = vld [vmem:[%s4665_s12 + $0x68] sm:$0xff] }
 0x26e   : > { %1967 = vmatpush.msrb.mxu2 %v2682_v22  ;;  %v2181_v22 = vld [vmem:[%s4665_s12 + $0x60] sm:$0xff] }
 0x270   : > { %1968 = vmatpush.msrb.mxu2 %v2680_v59  ;;  %v2180_v59 = vld [vmem:[%s4665_s12 + $0x58] sm:$0xff] }
 0x272   : > { %1969 = vmatpush.msrb.mxu2 %v2678_v23  ;;  %v2179_v23 = vld [vmem:[%s4665_s12 + $0x50] sm:$0xff] }
 0x273   : > { %1970 = vmatmul.f32.vlgmr.msrb.gmra.mxu2 %v1907_v56  ;;  %v2195_v56 = vld [vmem:[%s4665_s12 + $0xd0] sm:$0xff] }
 0x274   : > { %2221 = vmatpush.msra.mxu2 %v2200_v37  ;;  %v2187_v37 = vld [vmem:[%s4665_s12 + $0x90] sm:$0xff] }
 0x276   : > { %2222 = vmatpush.msra.mxu2 %v2199_v41  ;;  %v2171_v41 = vld [vmem:[%s4665_s12 + $0x10] sm:$0xff] }
 0x278   : > { %2223 = vmatpush.msra.mxu2 %v2198_v42  ;;  %v2098_v42 = vld [vmem:[%s4664_s11 + $0x8] sm:$0xff] }
 0x27a   : > { %2224 = vmatpush.msra.mxu2 %v2197_v47  ;;  %v2113_v47 = vld [vmem:[%s4664_s11 + $0x80] sm:$0xff] }
 0x27c   : > { %2225 = vmatpush.msra.mxu2 %v2196_v52  ;;  %v2257_v52 = vld [vmem:[%s4666_s13 + $0x78] sm:$0xff] }
 0x27e   : > { %2226 = vmatpush.msra.mxu2 %v2195_v56  ;;  %v2737_v56 = vld [vmem:[%s4666_s13 + $0xf0] sm:$0xff] }
 0x280   : > { %2227 = vmatpush.msra.mxu2 %v2194_v61  ;;  %v2255_v61 = vld [vmem:[%s4666_s13 + $0x68] sm:$0xff] }
 0x282   : > { %2228 = vmatpush.msra.mxu2 %v2193_v1  ;;  %v2735_v1 = vld [vmem:[%s4666_s13 + $0xe0] sm:$0xff] }
 0x284   : > { %2229 = vmatpush.msra.mxu2 %v2192_v8  ;;  %v2733_v8 = vld [vmem:[%s4666_s13 + $0xd0] sm:$0xff] }
 0x286   : > { %2230 = vmatpush.msra.mxu2 %v2191_v14  ;;  %v2732_v14 = vld [vmem:[%s4666_s13 + $0xc8] sm:$0xff] }
 0x2b0   : > { %v1739_v24 = vpop.f32.mrf.mxu0 }
 0x2b8   : > { %v1779_v27 = vpop.f32.mrf.mxu0 }
 0x2bb   : > { %v1841_v0 = vpop.f32.mrf.mxu3 }
 0x2c0   : > { %v1759_v28 = vpop.f32.mrf.mxu1 }
 0x2c1   : > { %v1780_v57 = vadd.f32 %v1779_v27, %v1759_v28  ;;  %v2104_v27 = vld [vmem:[%s4664_s11 + $0x38] sm:$0xff] }
 0x2c2   : > { %v2176_v28 = vld [vmem:[%s4665_s12 + $0x38] sm:$0xff] }
 0x2c3   : > { %v1842_v2 = vadd.f32 %v1841_v0, %v1780_v57  ;;  %v2754_v57 = vld [vmem:[%s4666_s13 + $0x178] sm:$0xff]  ;;  %v2254_v0 = vld [vmem:[%s4666_s13 + $0x60] sm:$0xff] }
 0x2c6   : > { %v1719_v25 = vpop.f32.mrf.mxu2 }
 0x2c7   : > { %v1740_v40 = vadd.f32 %v1739_v24, %v1719_v25  ;;  %v2178_v24 = vld [vmem:[%s4665_s12 + $0x48] sm:$0xff]  ;;  %v2105_v25 = vld [vmem:[%s4664_s11 + $0x40] sm:$0xff] }
 0x2c8   : > { %v1931_v21 = vpop.f32.mrf.mxu1  ;;  %2136 = vmatpush.msrb.mxu1 %v2105_v25  ;;  %v2246_v25 = vld [vmem:[%s4666_s13 + $0x20] sm:$0xff] }
 0x2ca   : > { %2137 = vmatpush.msrb.mxu1 %v2104_v27 }
 0x2ce   : > { %v1821_v26 = vpop.f32.mrf.mxu2 }
 0x2d0   : > { %v1801_v39 = vpop.f32.mrf.mxu0 }
 0x2d1   : > { %v1802_v12 = vadd.f32 %v1801_v39, %v1740_v40  ;;  %v2175_v39 = vld [vmem:[%s4665_s12 + $0x30] sm:$0xff]  ;;  %v2102_v40 = vld [vmem:[%s4664_s11 + $0x28] sm:$0xff] }
 0x2d3   : > { %v1822_v31 = vadd.f32 %v1821_v26, %v1802_v12  ;;  %v2177_v26 = vld [vmem:[%s4665_s12 + $0x40] sm:$0xff]  ;;  %v2174_v12 = vld [vmem:[%s4665_s12 + $0x28] sm:$0xff] }
 0x2d6   : > { %v4131_v29 = vpop.f32.mrf.mxu2 }
 0x2d7   : > { %v1862_v9 = vadd.f32 %v4131_v29, %v1842_v2  ;;  %v2103_v29 = vld [vmem:[%s4664_s11 + $0x30] sm:$0xff]  ;;  %v2751_v2 = vld [vmem:[%s4666_s13 + $0x160] sm:$0xff] }
 0x2d8   : > { %v1991_v5 = vpop.f32.mrf.mxu0  ;;  %2138 = vmatpush.msrb.mxu1 %v2103_v29  ;;  %v2745_v29 = vld [vmem:[%s4666_s13 + $0x130] sm:$0xff] }
 0x2da   : > { %2139 = vmatpush.msrb.mxu1 %v2102_v40  ;;  %v2744_v40 = vld [vmem:[%s4666_s13 + $0x128] sm:$0xff] }
 0x2de   : > { %v1951_v30 = vpop.f32.mrf.mxu2 }
 0x2df   : > { %v1952_v33 = vadd.f32 %v1951_v30, %v1931_v21  ;;  %v2190_v21 = vld [vmem:[%s4665_s12 + $0xa8] sm:$0xff]  ;;  %v2117_v30 = vld [vmem:[%s4664_s11 + $0xa0] sm:$0xff] }
 0x2e0   : > { %2231 = vmatpush.msra.mxu2 %v2190_v21  ;;  %v2244_v21 = vld [vmem:[%s4666_s13 + $0x10] sm:$0xff] }
 0x2e1   : > { %v1994_v35 = vadd.f32 %v1952_v33, %v1822_v31  ;;  %v2189_v31 = vld [vmem:[%s4665_s12 + $0xa0] sm:$0xff]  ;;  %v2116_v33 = vld [vmem:[%s4664_s11 + $0x98] sm:$0xff] }
 0x2e2   : > { %2232 = vmatpush.msra.mxu2 %v2189_v31  ;;  %v2742_v31 = vld [vmem:[%s4666_s13 + $0x118] sm:$0xff] }
 0x2e3   : > { %v2002_v36 = vadd.f32 %v1998_v34, %v1994_v35  ;;  %v2188_v34 = vld [vmem:[%s4665_s12 + $0x98] sm:$0xff]  ;;  %v2101_v35 = vld [vmem:[%s4664_s11 + $0x20] sm:$0xff] }
 0x2e4   : > { %2140 = vmatpush.msrb.mxu1 %v2101_v35  ;;  %2233 = vmatpush.msra.mxu2 %v2188_v34  ;;  %v2725_v34 = vld [vmem:[%s4666_s13 + $0x90] sm:$0xff] }
 0x2e5   : > { %v2004_v51 = vmax.f32 %v2002_v36, 0.0  ;;  %v2173_v36 = vld [vmem:[%s4665_s12 + $0x20] sm:$0xff]  ;;  %v2741_v35 = vld [vmem:[%s4666_s13 + $0x110] sm:$0xff] }
 0x2e6   : > { %2234 = vmatpush.msra.mxu2 %v2187_v37  ;;  %v2739_v37 = vld [vmem:[%s4666_s13 + $0x100] sm:$0xff] }
 0x2e7   : > { %2026 = vmatpush.msra.mxu3 %v2004_v51 }
 0x2e8   : > { %2719 = vmatmul.msk.f32.vlgmr.msra.gmra.mxu3 %vm2007_vm7, %v4142_v55  ;;  %2235 = vmatpush.msra.mxu2 %v2186_v46 }
 0x2e9   : > { %2070 = vmatpush.msrb.mxu3 %v2004_v51  ;;  %v2100_v51 = vld [vmem:[%s4664_s11 + $0x18] sm:$0xff] }
 0x2ea   : > { %2141 = vmatpush.msrb.mxu1 %v2100_v51  ;;  %2236 = vmatpush.msra.mxu2 %v2185_v48  ;;  %v2724_v51 = vld [vmem:[%s4666_s13 + $0x88] sm:$0xff] }
 0x2eb   : > { %2149 = vmatpush.msra.mxu3 %v2128_v32  ;;  %v2115_v32 = vld [vmem:[%s4664_s11 + $0x90] sm:$0xff] }
 0x2ed   : > { %2150 = vmatpush.msra.mxu3 %v2127_v38  ;;  %v2099_v38 = vld [vmem:[%s4664_s11 + $0x10] sm:$0xff] }
 0x2ee   : > { %2142 = vmatpush.msrb.mxu1 %v2099_v38  ;;  %v2387_v38 = vld [vmem:[%s4668_s15 + $0x78] sm:$0xff] }
 0x2ef   : > { %2151 = vmatpush.msra.mxu3 %v2126_v44  ;;  %v2114_v44 = vld [vmem:[%s4664_s11 + $0x88] sm:$0xff]  ;;  %2388 = vmatpush.msrb.mxu2 %v2387_v38  ;;  %v2441_v38 = vld [vmem:[%s4671_s18] sm:$0xff] }
 0x2f0   : > { %2721 = vmatmul.msk.f32.vlgmr.msrb.gmra.mxu3 %vm2007_vm7, %v2051_v50  ;;  %2143 = vmatpush.msrb.mxu1 %v2098_v42  ;;  %v2385_v42 = vld [vmem:[%s4668_s15 + $0x68] sm:$0xff] }
 0x2f1   : > { %2152 = vmatpush.msra.mxu3 %v2125_v49  ;;  %v2097_v49 = vld [vmem:[%s4664_s11] sm:$0xff] }
 0x2f2   : > { %2144 = vmatpush.msrb.mxu1 %v2097_v49 }
 0x2f3   : > { %2153 = vmatpush.msra.mxu3 %v2124_v53  ;;  %v2738_v53 = vld [vmem:[%s4666_s13 + $0xf8] sm:$0xff] }
 0x2f4   : > { %2278 = vmatpush.msra.mxu1 %v2738_v53 }
 0x2f5   : > { %2154 = vmatpush.msra.mxu3 %v2123_v58  ;;  %v2753_v58 = vld [vmem:[%s4666_s13 + $0x170] sm:$0xff] }
 0x2f6   : > { %v1971_v6 = vpop.f32.mrf.mxu2  ;;  %2279 = vmatpush.msra.mxu1 %v2737_v56 }
 0x2f7   : > { %2155 = vmatpush.msra.mxu3 %v2122_v62  ;;  %v1992_v10 = vadd.f32 %v1991_v5, %v1971_v6  ;;  %v2736_v62 = vld [vmem:[%s4666_s13 + $0xe8] sm:$0xff]  ;;  %v2750_v5 = vld [vmem:[%s4666_s13 + $0x158] sm:$0xff]  ;;  %v2252_v6 = vld [vmem:[%s4666_s13 + $0x50] sm:$0xff] }
 0x2f8   : > { %2280 = vmatpush.msra.mxu1 %v2736_v62  ;;  %v2378_v62 = vld [vmem:[%s4668_s15 + $0x30] sm:$0xff] }
 0x2f9   : > { %2156 = vmatpush.msra.mxu3 %v2121_v3  ;;  %v1995_v15 = vadd.f32 %v1992_v10, %v1862_v9  ;;  %v2253_v3 = vld [vmem:[%s4666_s13 + $0x58] sm:$0xff]  ;;  %v2749_v9 = vld [vmem:[%s4666_s13 + $0x150] sm:$0xff] }
 0x2fa   : > { %2281 = vmatpush.msra.mxu1 %v2735_v1  ;;  %v2375_v1 = vld [vmem:[%s4668_s15 + $0x18] sm:$0xff] }
 0x2fb   : > { %2157 = vmatpush.msra.mxu3 %v2120_v13  ;;  %v2003_v45 = vadd.f32 %v1999_v11, %v1995_v15  ;;  %v2251_v13 = vld [vmem:[%s4666_s13 + $0x48] sm:$0xff] }
 0x2fc   : > { %2282 = vmatpush.msra.mxu1 %v2734_v4  ;;  %v2748_v15 = vld [vmem:[%s4666_s13 + $0x148] sm:$0xff]  ;;  %v2372_v4 = vld [vmem:[%s4668_s15] sm:$0xff] }
 0x2fd   : > { %2158 = vmatpush.msra.mxu3 %v2119_v16  ;;  %v2005_v7 = vmax.f32 %v2003_v45, 0.0  ;;  %v2250_v16 = vld [vmem:[%s4666_s13 + $0x40] sm:$0xff] }
 0x2fe   : > { %2283 = vmatpush.msra.mxu1 %v2733_v8  ;;  %v2731_v45 = vld [vmem:[%s4666_s13 + $0xc0] sm:$0xff]  ;;  %v2413_v8 = vld [vmem:[%s4669_s16 + $0x28] sm:$0xff] }
 0x2ff   : > { %2046 = vmatpush.msra.mxu0 %v2005_v7  ;;  %2159 = vmatpush.msra.mxu3 %v2118_v20  ;;  %v2743_v20 = vld [vmem:[%s4666_s13 + $0x120] sm:$0xff] }
 0x300   : > { %2720 = vmatmul.msk.f32.vlgmr.msra.gmra.mxu0 %vm2007_vm7, %v4142_v55  ;;  %v2172_v55 = vld [vmem:[%s4665_s12 + $0x18] sm:$0xff]  ;;  %2284 = vmatpush.msra.mxu1 %v2732_v14 }
 0x301   : > { %2090 = vmatpush.msrb.mxu0 %v2005_v7  ;;  %2160 = vmatpush.msra.mxu3 %v2117_v30  ;;  %v2747_v7 = vld [vmem:[%s4666_s13 + $0x140] sm:$0xff]  ;;  %v2726_v30 = vld [vmem:[%s4666_s13 + $0x98] sm:$0xff] }
 0x302   : > { %2285 = vmatpush.msra.mxu1 %v2731_v45  ;;  %v2798_v45 = vld [vmem:[%s4667_s14] ss:$0 sm:$0xff] }
 0x303   : > { %2201 = vmatpush.msra.mxu0 %v2184_v17  ;;  %2161 = vmatpush.msra.mxu3 %v2116_v33  ;;  %v2249_v17 = vld [vmem:[%s4666_s13 + $0x38] sm:$0xff]  ;;  %v2243_v33 = vld [vmem:[%s4666_s13 + $0x8] sm:$0xff] }
 0x305   : > { %2202 = vmatpush.msra.mxu0 %v2183_v18  ;;  %2162 = vmatpush.msra.mxu3 %v2115_v32  ;;  %v2730_v18 = vld [vmem:[%s4666_s13 + $0xb8] sm:$0xff]  ;;  %v2740_v32 = vld [vmem:[%s4666_s13 + $0x108] sm:$0xff] }
 0x306   : > { %2286 = vmatpush.msra.mxu1 %v2730_v18 }
 0x307   : > { %2203 = vmatpush.msra.mxu0 %v2182_v19  ;;  %2163 = vmatpush.msra.mxu3 %v2114_v44  ;;  %v2746_v19 = vld [vmem:[%s4666_s13 + $0x138] sm:$0xff] }
 0x308   : > { %2722 = vmatmul.msk.f32.vlgmr.msrb.gmra.mxu0 %vm2007_vm7, %v2051_v50  ;;  %v2169_v50 = vld [vmem:[%s4665_s12] sm:$0xff]  ;;  %v2383_v44 = vld [vmem:[%s4668_s15 + $0x58] sm:$0xff] }
 0x309   : > { %2204 = vmatpush.msra.mxu0 %v2181_v22  ;;  %2164 = vmatpush.msra.mxu3 %v2113_v47  ;;  %v2248_v22 = vld [vmem:[%s4666_s13 + $0x30] sm:$0xff] }
 0x30b   : > { %2205 = vmatpush.msra.mxu0 %v2180_v59  ;;  %2298 = vmatpush.msrb.mxu3 %v2257_v52  ;;  %v2729_v59 = vld [vmem:[%s4666_s13 + $0xb0] sm:$0xff] }
 0x30c   : > { %2287 = vmatpush.msra.mxu1 %v2729_v59 }
 0x30d   : > { %2206 = vmatpush.msra.mxu0 %v2179_v23  ;;  %2299 = vmatpush.msrb.mxu3 %v2256_v54 }
 0x30f   : > { %2207 = vmatpush.msra.mxu0 %v2178_v24  ;;  %2300 = vmatpush.msrb.mxu3 %v2255_v61  ;;  %v2247_v24 = vld [vmem:[%s4666_s13 + $0x28] sm:$0xff]  ;;  %v2379_v61 = vld [vmem:[%s4668_s15 + $0x38] sm:$0xff] }
 0x311   : > { %2208 = vmatpush.msra.mxu0 %v2177_v26  ;;  %2301 = vmatpush.msrb.mxu3 %v2254_v0  ;;  %v2245_v26 = vld [vmem:[%s4666_s13 + $0x18] sm:$0xff]  ;;  %v2376_v0 = vld [vmem:[%s4668_s15 + $0x20] sm:$0xff] }
 0x313   : > { %2209 = vmatpush.msra.mxu0 %v2176_v28  ;;  %2302 = vmatpush.msrb.mxu3 %v2253_v3  ;;  %v2373_v3 = vld [vmem:[%s4668_s15 + $0x8] sm:$0xff] }
 0x315   : > { %2210 = vmatpush.msra.mxu0 %v2175_v39  ;;  %2303 = vmatpush.msrb.mxu3 %v2252_v6  ;;  %v2728_v39 = vld [vmem:[%s4666_s13 + $0xa8] sm:$0xff]  ;;  %v2414_v6 = vld [vmem:[%s4669_s16 + $0x30] sm:$0xff] }
 0x316   : > { %2288 = vmatpush.msra.mxu1 %v2728_v39  ;;  %v2455_v39 = vld [vmem:[%s4671_s18 + $0x70] sm:$0xff] }
 0x317   : > { %2211 = vmatpush.msra.mxu0 %v2174_v12  ;;  %2304 = vmatpush.msrb.mxu3 %v2251_v13  ;;  %v2727_v12 = vld [vmem:[%s4666_s13 + $0xa0] sm:$0xff] }
 0x318   : > { %2289 = vmatpush.msra.mxu1 %v2727_v12  ;;  %v2453_v12 = vld [vmem:[%s4671_s18 + $0x60] sm:$0xff] }
 0x319   : > { %2212 = vmatpush.msra.mxu0 %v2173_v36  ;;  %2305 = vmatpush.msrb.mxu3 %v2250_v16  ;;  %v2242_v36 = vld [vmem:[%s4666_s13] sm:$0xff] }
 0x31a   : > { %2290 = vmatpush.msra.mxu1 %v2726_v30  ;;  %v2450_v30 = vld [vmem:[%s4671_s18 + $0x48] sm:$0xff] }
 0x31b   : > { %2213 = vmatpush.msra.mxu0 %v2172_v55  ;;  %2306 = vmatpush.msrb.mxu3 %v2249_v17  ;;  %v2723_v55 = vld [vmem:[%s4666_s13 + $0x80] sm:$0xff] }
 0x31c   : > { %2291 = vmatpush.msra.mxu1 %v2725_v34  ;;  %v2447_v34 = vld [vmem:[%s4671_s18 + $0x30] sm:$0xff] }
 0x31d   : > { %2214 = vmatpush.msra.mxu0 %v2171_v41  ;;  %2307 = vmatpush.msrb.mxu3 %v2248_v22  ;;  %v2386_v41 = vld [vmem:[%s4668_s15 + $0x70] sm:$0xff] }
 0x31e   : > { %2292 = vmatpush.msra.mxu1 %v2724_v51  ;;  %2389 = vmatpush.msrb.mxu2 %v2386_v41  ;;  %v2444_v51 = vld [vmem:[%s4671_s18 + $0x18] sm:$0xff]  ;;  %v2416_v41 = vld [vmem:[%s4670_s17] sm:$0x1] }
 0x31f   : > { %2215 = vmatpush.msra.mxu0 %v2170_v43  ;;  %2308 = vmatpush.msrb.mxu3 %v2247_v24  ;;  %v2384_v43 = vld [vmem:[%s4668_s15 + $0x60] sm:$0xff] }
 0x320   : > { %2293 = vmatpush.msra.mxu1 %v2723_v55  ;;  %2390 = vmatpush.msrb.mxu2 %v2385_v42 }
 0x321   : > { %2216 = vmatpush.msra.mxu0 %v2169_v50  ;;  %2309 = vmatpush.msrb.mxu3 %v2246_v25 }
 0x322   : > { %2391 = vmatpush.msrb.mxu2 %v2384_v43 }
 0x323   : > { %2337 = vmatpush.msrb.mxu0 %v2754_v57  ;;  %2310 = vmatpush.msrb.mxu3 %v2245_v26  ;;  %v2382_v57 = vld [vmem:[%s4668_s15 + $0x50] sm:$0xff] }
 0x324   : > { %2392 = vmatpush.msrb.mxu2 %v2383_v44 }
 0x325   : > { %2338 = vmatpush.msrb.mxu0 %v2753_v58  ;;  %2311 = vmatpush.msrb.mxu3 %v2244_v21  ;;  %v2381_v58 = vld [vmem:[%s4668_s15 + $0x48] sm:$0xff]  ;;  %v2451_v21 = vld [vmem:[%s4671_s18 + $0x50] sm:$0xff] }
 0x326   : > { %2393 = vmatpush.msrb.mxu2 %v2382_v57 }
 0x327   : > { %2339 = vmatpush.msrb.mxu0 %v2752_v63  ;;  %2312 = vmatpush.msrb.mxu3 %v2243_v33  ;;  %v2377_v63 = vld [vmem:[%s4668_s15 + $0x28] sm:$0xff]  ;;  %v2448_v33 = vld [vmem:[%s4671_s18 + $0x38] sm:$0xff] }
 0x328   : > { %2394 = vmatpush.msrb.mxu2 %v2381_v58 }
 0x329   : > { %2340 = vmatpush.msrb.mxu0 %v2751_v2  ;;  %2313 = vmatpush.msrb.mxu3 %v2242_v36  ;;  %v2374_v2 = vld [vmem:[%s4668_s15 + $0x10] sm:$0xff]  ;;  %v2445_v36 = vld [vmem:[%s4671_s18 + $0x20] sm:$0xff] }
 0x32b   : > { %2341 = vmatpush.msrb.mxu0 %v2750_v5  ;;  %v2415_v5 = vld [vmem:[%s4669_s16 + $0x38] sm:$0xff] }
 0x32d   : > { %2342 = vmatpush.msrb.mxu0 %v2749_v9  ;;  %v2412_v9 = vld [vmem:[%s4669_s16 + $0x20] sm:$0xff] }
 0x32f   : > { %2343 = vmatpush.msrb.mxu0 %v2748_v15  ;;  %v2409_v15 = vld [vmem:[%s4669_s16 + $0x8] sm:$0xff] }
 0x331   : > { %2344 = vmatpush.msrb.mxu0 %v2747_v7 }
 0x333   : > { %2345 = vmatpush.msrb.mxu0 %v2746_v19 }
 0x335   : > { %2346 = vmatpush.msrb.mxu0 %v2745_v29  ;;  %v2456_v29 = vld [vmem:[%s4671_s18 + $0x78] sm:$0xff] }
 0x337   : > { %2347 = vmatpush.msrb.mxu0 %v2744_v40  ;;  %v2454_v40 = vld [vmem:[%s4671_s18 + $0x68] sm:$0xff] }
 0x339   : > { %2348 = vmatpush.msrb.mxu0 %v2743_v20  ;;  %v2452_v20 = vld [vmem:[%s4671_s18 + $0x58] sm:$0xff] }
 0x33b   : > { %2349 = vmatpush.msrb.mxu0 %v2742_v31  ;;  %v2449_v31 = vld [vmem:[%s4671_s18 + $0x40] sm:$0xff] }
 0x33d   : > { %2350 = vmatpush.msrb.mxu0 %v2741_v35  ;;  %v2446_v35 = vld [vmem:[%s4671_s18 + $0x28] sm:$0xff] }
 0x33f   : > { %2351 = vmatpush.msrb.mxu0 %v2740_v32  ;;  %v2443_v32 = vld [vmem:[%s4671_s18 + $0x10] sm:$0xff] }
 0x341   : > { %2352 = vmatpush.msrb.mxu0 %v2739_v37  ;;  %v2442_v37 = vld [vmem:[%s4671_s18 + $0x8] sm:$0xff] }
 0x36b   : > { %v2028_v60 = vpop.f32.mrf.mxu3 }
 0x373   : > { %v2072_v10 = vpop.f32.mrf.mxu3 }
 0x374   : > { %v2095_v11 = vmax.f32 %v2028_v60, %v2072_v10  ;;  %v2380_v60 = vld [vmem:[%s4668_s15 + $0x40] sm:$0xff]  ;;  %v2411_v10 = vld [vmem:[%s4669_s16 + $0x18] sm:$0xff] }
 0x375   : > { %2395 = vmatpush.msrb.mxu2 %v2380_v60 }
 0x376   : > { %2145 = vmatmul.f32.vlgmr.msrb.gmra.mxu1 %v2095_v11  ;;  %2217 = vmatmul.f32.vlgmr.msra.gmra.mxu0 %v2095_v11  ;;  %v2410_v11 = vld [vmem:[%s4669_s16 + $0x10] sm:$0xff] }
 0x377   : > { %2396 = vmatpush.msrb.mxu2 %v2379_v61  ;;  %2428 = vmatpush.msrb.mxu1 %v2415_v5 }
 0x379   : > { %2397 = vmatpush.msrb.mxu2 %v2378_v62  ;;  %2429 = vmatpush.msrb.mxu1 %v2414_v6 }
 0x37b   : > { %2398 = vmatpush.msrb.mxu2 %v2377_v63  ;;  %2430 = vmatpush.msrb.mxu1 %v2413_v8 }
 0x37d   : > { %v2048_v23 = vpop.f32.mrf.mxu0  ;;  %2399 = vmatpush.msrb.mxu2 %v2376_v0  ;;  %2431 = vmatpush.msrb.mxu1 %v2412_v9 }
 0x37f   : > { %2400 = vmatpush.msrb.mxu2 %v2375_v1  ;;  %2432 = vmatpush.msrb.mxu1 %v2411_v10 }
 0x381   : > { %2401 = vmatpush.msrb.mxu2 %v2374_v2  ;;  %2433 = vmatpush.msrb.mxu1 %v2410_v11 }
 0x383   : > { %2402 = vmatpush.msrb.mxu2 %v2373_v3  ;;  %2434 = vmatpush.msrb.mxu1 %v2409_v15 }
 0x385   : > { %v2092_v27 = vpop.f32.mrf.mxu0  ;;  %2403 = vmatpush.msrb.mxu2 %v2372_v4 }
 0x386   : > { %v2096_v28 = vmax.f32 %v2048_v23, %v2092_v27 }
 0x388   : > { %2165 = vmatmul.f32.vlgmr.msra.gmra.mxu3 %v2096_v28  ;;  %2237 = vmatmul.f32.vlgmr.msra.gmra.mxu2 %v2096_v28  ;;  %v2408_v28 = vld [vmem:[%s4669_s16] sm:$0xff] }
 0x389   : > { %2435 = vmatpush.msrb.mxu1 %v2408_v28  ;;  %2458 = vmatpush.msra.mxu3 %v2456_v29 }
 0x38b   : > { %2459 = vmatpush.msra.mxu3 %v2455_v39 }
 0x38d   : > { %2460 = vmatpush.msra.mxu3 %v2454_v40 }
 0x38f   : > { %2461 = vmatpush.msra.mxu3 %v2453_v12 }
 0x391   : > { %2462 = vmatpush.msra.mxu3 %v2452_v20 }
 0x393   : > { %2463 = vmatpush.msra.mxu3 %v2451_v21 }
 0x395   : > { %2464 = vmatpush.msra.mxu3 %v2450_v30 }
 0x397   : > { %2465 = vmatpush.msra.mxu3 %v2449_v31 }
 0x399   : > { %2466 = vmatpush.msra.mxu3 %v2448_v33 }
 0x39b   : > { %2467 = vmatpush.msra.mxu3 %v2447_v34 }
 0x39d   : > { %2468 = vmatpush.msra.mxu3 %v2446_v35 }
 0x39f   : > { %2469 = vmatpush.msra.mxu3 %v2445_v36 }
 0x3a1   : > { %2470 = vmatpush.msra.mxu3 %v2444_v51 }
 0x3a3   : > { %2471 = vmatpush.msra.mxu3 %v2443_v32 }
 0x3a5   : > { %2472 = vmatpush.msra.mxu3 %v2442_v37 }
 0x3a7   : > { %2473 = vmatpush.msra.mxu3 %v2441_v38 }
 0x3f3   : > { %v2146_v46 = vpop.f32.mrf.mxu1  ;;  %v2218_v47 = vpop.f32.mrf.mxu0 }
 0x40b   : > { %v2166_v48 = vpop.f32.mrf.mxu3  ;;  %v2238_v49 = vpop.f32.mrf.mxu2 }
 0x40c   : > { %v2167_v50 = vadd.f32 %v2166_v48, %v2146_v46  ;;  %v2239_v52 = vadd.f32 %v2238_v49, %v2218_v47  ;;  %v2457_v46 = vld [vmem:[%s4672_s19] sm:$0x1] }
 0x40e   : > { %v2241_v53 = vmax.f32 %v2167_v50, %v2239_v52 }
 0x410   : > { %v2276_v54 = vrot.slane %v2241_v53, 1  ;;  %v2335_v56 = vrot.slane %v2241_v53, 2  ;;  %2314 = vmatmul.f32.vlgmr.msrb.gmra.mxu3 %v2241_v53 }
 0x412   : > { %2294 = vmatmul.f32.vlgmr.msra.gmra.mxu1 %v2276_v54  ;;  %2353 = vmatmul.f32.vlgmr.msrb.gmra.mxu0 %v2335_v56 }
 0x48f   : > { %v2295_v13 = vpop.f32.mrf.mxu1  ;;  %v2354_v7 = vpop.f32.mrf.mxu0 }
 0x493   : > { %v2315_v14 = vpop.f32.mrf.mxu3 }
 0x494   : > { %v2316_v16 = vadd.f32 %v2315_v14, %v2295_v13 }
 0x496   : > { %v2357_v17 = vadd.f32 %v2354_v7, %v2316_v16 }
 0x498   : > { %v2362_v18 = vadd.f32 %v2798_v45, %v2357_v17 }
 0x49a   : > { %v2363_v19 = vmax.f32 %v2362_v18, 0.0 }
 0x49c   : > { %v2365_v22 = vsel %vm2364_vm8, %v2363_v19, 0.0 }
 0x49d   : > { %v2366_v59 = vrot.slane %v2365_v22, 4 }
 0x49f   : > { %v2367_v23 = vadd.f32 %v2366_v59, %v2365_v22 }
 0x4a1   : > { %v2368_v24 = vrot.slane %v2367_v23, 2 }
 0x4a3   : > { %v2369_v25 = vadd.f32 %v2368_v24, %v2367_v23 }
 0x4a5   : > { %v2370_v26 = vrot.slane %v2369_v25, 1 }
 0x4a7   : > { %v2371_v27 = vadd.f32 %v2370_v26, %v2369_v25 }
 0x4a9   : > { %2404 = vmatmul.f32.vlgmr.msrb.gmra.mxu2 %v2371_v27 }
 0x52c   : > { %v2405_v55 = vpop.f32.mrf.mxu2 }
 0x52d   : > { %2755 = vmatmul.msk.f32.vlgmr.msrb.gmra.mxu1 %vm1240_vm5, %v2405_v55 }
 0x5aa   : > { %v2437_v42 = vpop.f32.mrf.mxu1 }
 0x5ab   : > { %v2438_v43 = vadd.f32 %v2437_v42, %v2416_v41 }
 0x5ad   : > { %v2440_v44 = vmax.f32 %v2438_v43, 0.0 }
 0x5af   : > { %2474 = vmatmul.f32.vlgmr.msra.gmra.mxu3 %v2440_v44 }
 0x632   : > { %v2475_v47 = vpop.f32.mrf.mxu3 }
 0x633   : > { %v2476_v48 = vadd.f32 %v2475_v47, %v2457_v46 }
 0x635   : > { %2479 = vst.msk [vmem:[%s621_s3] sm:$0x1] %vm2478_vm9, %v2476_v48 }
 0x636   : > { %2826 = shalt.err (!%p2823_p3)
}
 0x637   : > { %2759 = dma.vmem_to_hbm [thread:$0]  (%p3006_p5), %s2492_s23, 16, %s2494_s5, %s2481_s27  }
 0x638 PF: > { %s4710_s0 = sld [smem:[#allocation7_spill]] }
 0x639   : > { %s4711_s28 = sld [smem:[#allocation5_spill]] }
 0x63e   : > { %p2765_p4 = scmp.ge.s32.totalorder %s4710_s0, 2 }
 0x63f   : > { %s2505_s7 = sand.u32 1, %s4711_s28  }
 0x640   : > { %p2762_p7 = pnand %p2765_p4, %p3010_p6  ;;  %s2506_s2 = scalar_lea.sflag [#allocation3], %s2505_s7 }
 0x642   : > { %p2763_p8 = pneg %p2762_p7 }
 0x644   : > { %2844 = dma.done.wait (%p2763_p8), %s2506_s2, 16  }
 0x645   : > { %2846 = vsyncadd (%p2763_p8), %s2506_s2, 4294967280  ;;  %s4713_s24 = sld [smem:[#allocation8_spill]]  ;;  %s4716_s1 = smov %s2853_s22 }
 0x646   : > { %s4714_s6 = sld [smem:[#allocation6_spill]] }
 0x647   : > { %s4715_s23 = sld [smem:[#allocation9_spill]] }
 0x64b   : > { %p30_p9 = scmp.ge.s32.totalorder %s4713_s24, 4  }
 0x64c   : > { %s4717_s22 = smov %s4714_s6 }
 0x64d   :  { %32 = sbr.rel (!%p30_p9) target bundleno = 12 (0xc), region = 141 }
 0x652   :  { %2511 = vsyncpa [#allocation3], 1 }
 0x653   :  { %2513 = vsyncpa [#allocation3 + $0x1], 1 }

</bundles_post_ra>
